<compile_context>
chip_gen: v7x
topology: tpu7x:2x2x1
jax: 0.10.0
libtpu: 0.0.40
codegen_flags: <defaults>
</compile_context>

<pallas_src>
import functools
import math

import jax
import jax.numpy as jnp
import numpy as np
from jax.experimental import pallas as pl
from jax.experimental.pallas import tpu as pltpu


def _layernorm(x, gamma, beta, eps):
    mu = jnp.mean(x, axis=-1, keepdims=True)
    xc = x - mu
    var = jnp.mean(xc * xc, axis=-1, keepdims=True)
    return xc * jax.lax.rsqrt(var + eps) * gamma + beta


def fused_two_layer_kernel(pe_ref, x_ref,
                           wq_ref, bq_ref, wk_ref, bk_ref, wv_ref, bv_ref,
                           wo_ref, bo_ref,
                           ln1g_ref, ln1b_ref,
                           w1_ref, b1_ref, w2_ref, b2_ref,
                           ln2g_ref, ln2b_ref,
                           out_ref, attn_ref,
                           *, nhead, eps):
    """PE-add + two stacked applications of encoder-layer-1, one batch element."""
    x0 = x_ref[0] + pe_ref[...]            # (S, E) f32; PE add fused into the kernel
    S, E = x0.shape

    def encoder_layer(xin, want_attn):
        ctx = jnp.zeros((S, E), jnp.float32)
        attn_acc = jnp.zeros((S, S), jnp.float32) if want_attn else None
        # Static unroll over heads; per-head accumulation keeps only `ctx` /
        # `attn_acc` live across iterations (no head_outs list, no concat).
        for h in range(nhead):
            q = jnp.dot(xin, wq_ref[h],
                        preferred_element_type=jnp.float32) + bq_ref[h]   # scale folded
            k = jnp.dot(xin, wk_ref[h],
                        preferred_element_type=jnp.float32) + bk_ref[h]
            v = jnp.dot(xin, wv_ref[h],
                        preferred_element_type=jnp.float32) + bv_ref[h]
            # scores: contract the head dim of q and k (no explicit transpose)
            s = jax.lax.dot_general(q, k, (((1,), (1,)), ((), ())),
                                    preferred_element_type=jnp.float32)   # (S, S)
            m = jnp.max(s, axis=-1, keepdims=True)
            e = jnp.exp(s - m)
            p = e * pl.reciprocal(jnp.sum(e, axis=-1, keepdims=True), approx=False)
            if want_attn:
                attn_acc = attn_acc + p
            # out-projection accumulated per head: ctx += (p @ v_h) @ Wo_h
            pv = jnp.dot(p, v, preferred_element_type=jnp.float32)         # (S, D)
            ctx = ctx + jnp.dot(pv, wo_ref[h],
                                preferred_element_type=jnp.float32)        # (S, E)
        ctx = ctx + bo_ref[...]

        # residual + LayerNorm 1  (dropout = identity, eval mode)
        h1 = _layernorm(xin + ctx, ln1g_ref[...], ln1b_ref[...], eps)

        # FFN: relu(h1 @ W1 + b1) @ W2 + b2
        f = jnp.dot(h1, w1_ref[...], preferred_element_type=jnp.float32) + b1_ref[...]
        f = jnp.maximum(f, 0.0)
        f = jnp.dot(f, w2_ref[...], preferred_element_type=jnp.float32) + b2_ref[...]

        # residual + LayerNorm 2
        out = _layernorm(h1 + f, ln2g_ref[...], ln2b_ref[...], eps)
        return out, attn_acc

    # Layer-1 applied twice with the SAME weights (matches the reference
    # module's forward — do not "fix").  Attention weights only from pass 1.
    h1_out, attn = encoder_layer(x0, want_attn=True)
    attn_ref[0] = attn * (1.0 / nhead)
    out2, _ = encoder_layer(h1_out, want_attn=False)
    out_ref[0] = out2


def _const_spec(arr):
    """Whole-array resident block, independent of the batch-grid index."""
    zeros = (0,) * arr.ndim
    return pl.BlockSpec(arr.shape, lambda b, _z=zeros: _z)


def transformer_attention_forward(src, p, *, nhead, eps=1e-5):
    """src: (S, B, E) — PyTorch (seq, batch, feature) layout.

    Returns (out (S,B,E), attn (B,S,S))."""
    S, B, E = src.shape
    xb = jnp.transpose(src, (1, 0, 2))     # (B, S, E); tiny glue at demo scale
    pe = p["pe"][:S]                       # (S, E) resident const input

    kernel = functools.partial(fused_two_layer_kernel, nhead=nhead, eps=eps)

    out, attn = pl.pallas_call(
        kernel,
        out_shape=(jax.ShapeDtypeStruct((B, S, E), jnp.float32),
                   jax.ShapeDtypeStruct((B, S, S), jnp.float32)),
        grid_spec=pltpu.PrefetchScalarGridSpec(
            num_scalar_prefetch=0,
            grid=(B,),
            in_specs=[
                _const_spec(pe),                                  # positional encoding
                pl.BlockSpec((1, S, E), lambda b: (b, 0, 0)),     # activations
                _const_spec(p["wq_s"]), _const_spec(p["bq_s"]),   # q proj (pre-scaled)
                _const_spec(p["wk"]),   _const_spec(p["bk"]),     # k proj
                _const_spec(p["wv"]),   _const_spec(p["bv"]),     # v proj
                _const_spec(p["wo"]),   _const_spec(p["bo"]),     # out proj
                _const_spec(p["ln1g"]), _const_spec(p["ln1b"]),   # layernorm 1
                _const_spec(p["w1"]),   _const_spec(p["b1"]),     # ffn linear1
                _const_spec(p["w2"]),   _const_spec(p["b2"]),     # ffn linear2
                _const_spec(p["ln2g"]), _const_spec(p["ln2b"]),   # layernorm 2
            ],
            out_specs=[
                pl.BlockSpec((1, S, E), lambda b: (b, 0, 0)),
                pl.BlockSpec((1, S, S), lambda b: (b, 0, 0)),
            ],
        ),
        compiler_params=pltpu.CompilerParams(
            dimension_semantics=("parallel",)),   # batch axis -> megacore on v7x
    )(pe, xb,
      p["wq_s"], p["bq_s"], p["wk"], p["bk"], p["wv"], p["bv"],
      p["wo"], p["bo"], p["ln1g"], p["ln1b"],
      p["w1"], p["b1"], p["w2"], p["b2"], p["ln2g"], p["ln2b"])

    return jnp.transpose(out, (1, 0, 2)), attn    # (S,B,E), (B,S,S)


def init_params(key, d_model, nhead, dim_ff, max_len=64):
    D = d_model // nhead
    ks = jax.random.split(key, 10)

    def unif(k, shape, fan_in):
        b = 1.0 / np.sqrt(fan_in)
        return jax.random.uniform(k, shape, jnp.float32, -b, b)

    # sinusoidal positional-encoding buffer, pe[pos, dim]
    pos = np.arange(max_len, dtype=np.float32)[:, None]
    div = np.exp(np.arange(0, d_model, 2, dtype=np.float32)
                 * (-math.log(10000.0) / d_model))
    pe = np.zeros((max_len, d_model), np.float32)
    pe[:, 0::2] = np.sin(pos * div)
    pe[:, 1::2] = np.cos(pos * div)

    scale = 1.0 / np.sqrt(D)   # q-scale folded into wq/bq once, at init

    return {
        "pe":   jnp.asarray(pe),
        # per-head projection weights, already transposed to x @ W form:
        #   wq/wk/wv: (nhead, E, D), biases: (nhead, 1, D), wo: (nhead, D, E)
        "wq_s": unif(ks[0], (nhead, d_model, D), d_model) * scale,
        "bq_s": unif(ks[1], (nhead, 1, D), d_model) * scale,
        "wk":   unif(ks[2], (nhead, d_model, D), d_model),
        "bk":   unif(ks[3], (nhead, 1, D), d_model),
        "wv":   unif(ks[4], (nhead, d_model, D), d_model),
        "bv":   unif(ks[5], (nhead, 1, D), d_model),
        "wo":   unif(ks[6], (nhead, D, d_model), d_model),
        "bo":   unif(ks[7], (1, d_model), d_model),
        "ln1g": jnp.ones((1, d_model), jnp.float32),
        "ln1b": jnp.zeros((1, d_model), jnp.float32),
        "w1":   unif(ks[8], (d_model, dim_ff), d_model),
        "b1":   jnp.zeros((1, dim_ff), jnp.float32),
        "w2":   unif(ks[9], (dim_ff, d_model), dim_ff),
        "b2":   jnp.zeros((1, d_model), jnp.float32),
        "ln2g": jnp.ones((1, d_model), jnp.float32),
        "ln2b": jnp.zeros((1, d_model), jnp.float32),
    }


def reference_forward(src, p, *, nhead, eps=1e-5):
    """Pure-JAX reference mirroring the PyTorch module (eval mode)."""
    S, B, E = src.shape
    D = E // nhead
    x = jnp.transpose(src, (1, 0, 2)) + p["pe"][None, :S, :]

    # rebuild full (E,E) projection matrices from the per-head layout
    Wq = jnp.transpose(p["wq_s"], (1, 0, 2)).reshape(E, E)   # q-scale already folded
    bq = p["bq_s"].reshape(E)
    Wk = jnp.transpose(p["wk"], (1, 0, 2)).reshape(E, E)
    bk = p["bk"].reshape(E)
    Wv = jnp.transpose(p["wv"], (1, 0, 2)).reshape(E, E)
    bv = p["bv"].reshape(E)
    Wo = p["wo"].reshape(E, E)

    def ln(h, g, b):
        mu = h.mean(-1, keepdims=True)
        var = ((h - mu) ** 2).mean(-1, keepdims=True)
        return (h - mu) / jnp.sqrt(var + eps) * g + b

    def layer(xb):
        q = xb @ Wq + bq        # already includes the 1/sqrt(D) scale
        k = xb @ Wk + bk
        v = xb @ Wv + bv
        qh = q.reshape(B, S, nhead, D).transpose(0, 2, 1, 3)
        kh = k.reshape(B, S, nhead, D).transpose(0, 2, 1, 3)
        vh = v.reshape(B, S, nhead, D).transpose(0, 2, 1, 3)
        s = jnp.einsum("bhqd,bhkd->bhqk", qh, kh)
        pw = jax.nn.softmax(s, axis=-1)
        attn = pw.mean(axis=1)
        o = jnp.einsum("bhqk,bhkd->bhqd", pw, vh)
        o = o.transpose(0, 2, 1, 3).reshape(B, S, E)
        o = o @ Wo + p["bo"]
        h1 = ln(xb + o, p["ln1g"], p["ln1b"])
        f = jax.nn.relu(h1 @ p["w1"] + p["b1"]) @ p["w2"] + p["b2"]
        return ln(h1 + f, p["ln2g"], p["ln2b"]), attn

    h, attn = layer(x)
    out, _ = layer(h)            # layer-1 weights reused, matches the module
    return jnp.transpose(out, (1, 0, 2)), attn


if __name__ == "__main__":
    # small demo shapes: seq=8, batch=2, d_model(ninp)=32, nhead=4, nhid=64
    S, B, E, H, FF = 8, 2, 32, 4, 64

    key = jax.random.PRNGKey(0)
    kx, kp = jax.random.split(key)
    src = jax.random.normal(kx, (S, B, E), jnp.float32)
    params = init_params(kp, E, H, FF, max_len=64)

    out, attn = transformer_attention_forward(src, params, nhead=H)
    out = jax.block_until_ready(out)
    attn = jax.block_until_ready(attn)

    out_ref, attn_ref = reference_forward(src, params, nhead=H)
    out_ref = jax.block_until_ready(out_ref)
    attn_ref = jax.block_until_ready(attn_ref)

    np.testing.assert_allclose(np.asarray(out), np.asarray(out_ref),
                               rtol=5e-3, atol=5e-3)
    np.testing.assert_allclose(np.asarray(attn), np.asarray(attn_ref),
                               rtol=5e-3, atol=5e-3)
    assert out.shape == (S, B, E) and attn.shape == (B, S, S)

    print("KERNEL_OK")
</pallas_src>

<mosaic_0001>
module attributes {stable_mosaic.version = 11 : i64} {
  func.func @fused_two_layer_kernel(%arg0: i32, %arg1: memref<8x32xf32, #tpu.memory_space<vmem>>, %arg2: memref<1x8x32xf32, #tpu.memory_space<vmem>>, %arg3: memref<4x32x8xf32, #tpu.memory_space<vmem>>, %arg4: memref<4x1x8xf32, #tpu.memory_space<vmem>>, %arg5: memref<4x32x8xf32, #tpu.memory_space<vmem>>, %arg6: memref<4x1x8xf32, #tpu.memory_space<vmem>>, %arg7: memref<4x32x8xf32, #tpu.memory_space<vmem>>, %arg8: memref<4x1x8xf32, #tpu.memory_space<vmem>>, %arg9: memref<4x8x32xf32, #tpu.memory_space<vmem>>, %arg10: memref<1x32xf32, #tpu.memory_space<vmem>>, %arg11: memref<1x32xf32, #tpu.memory_space<vmem>>, %arg12: memref<1x32xf32, #tpu.memory_space<vmem>>, %arg13: memref<32x64xf32, #tpu.memory_space<vmem>>, %arg14: memref<1x64xf32, #tpu.memory_space<vmem>>, %arg15: memref<64x32xf32, #tpu.memory_space<vmem>>, %arg16: memref<1x32xf32, #tpu.memory_space<vmem>>, %arg17: memref<1x32xf32, #tpu.memory_space<vmem>>, %arg18: memref<1x32xf32, #tpu.memory_space<vmem>>, %arg19: memref<1x8x32xf32, #tpu.memory_space<vmem>>, %arg20: memref<1x8x8xf32, #tpu.memory_space<vmem>>) attributes {dimension_semantics = [#tpu.dimension_semantics<parallel>], iteration_bounds = array<i64: 2>, scalar_prefetch = 0 : i64, scratch_operands = 0 : i64, tpu.core_type = #tpu.core_type<tc>, window_params = [{pipeline_mode = #tpu.pipeline_mode<synchronous>, transform_indices = @transform_0, window_bounds = array<i64: 8, 32>}, {transform_indices = @transform_1, window_bounds = array<i64: 1, 8, 32>}, {pipeline_mode = #tpu.pipeline_mode<synchronous>, transform_indices = @transform_2, window_bounds = array<i64: 4, 32, 8>}, {pipeline_mode = #tpu.pipeline_mode<synchronous>, transform_indices = @transform_3, window_bounds = array<i64: 4, 1, 8>}, {pipeline_mode = #tpu.pipeline_mode<synchronous>, transform_indices = @transform_4, window_bounds = array<i64: 4, 32, 8>}, {pipeline_mode = #tpu.pipeline_mode<synchronous>, transform_indices = @transform_5, window_bounds = array<i64: 4, 1, 8>}, {pipeline_mode = #tpu.pipeline_mode<synchronous>, transform_indices = @transform_6, window_bounds = array<i64: 4, 32, 8>}, {pipeline_mode = #tpu.pipeline_mode<synchronous>, transform_indices = @transform_7, window_bounds = array<i64: 4, 1, 8>}, {pipeline_mode = #tpu.pipeline_mode<synchronous>, transform_indices = @transform_8, window_bounds = array<i64: 4, 8, 32>}, {pipeline_mode = #tpu.pipeline_mode<synchronous>, transform_indices = @transform_9, window_bounds = array<i64: 1, 32>}, {pipeline_mode = #tpu.pipeline_mode<synchronous>, transform_indices = @transform_10, window_bounds = array<i64: 1, 32>}, {pipeline_mode = #tpu.pipeline_mode<synchronous>, transform_indices = @transform_11, window_bounds = array<i64: 1, 32>}, {pipeline_mode = #tpu.pipeline_mode<synchronous>, transform_indices = @transform_12, window_bounds = array<i64: 32, 64>}, {pipeline_mode = #tpu.pipeline_mode<synchronous>, transform_indices = @transform_13, window_bounds = array<i64: 1, 64>}, {pipeline_mode = #tpu.pipeline_mode<synchronous>, transform_indices = @transform_14, window_bounds = array<i64: 64, 32>}, {pipeline_mode = #tpu.pipeline_mode<synchronous>, transform_indices = @transform_15, window_bounds = array<i64: 1, 32>}, {pipeline_mode = #tpu.pipeline_mode<synchronous>, transform_indices = @transform_16, window_bounds = array<i64: 1, 32>}, {pipeline_mode = #tpu.pipeline_mode<synchronous>, transform_indices = @transform_17, window_bounds = array<i64: 1, 32>}, {transform_indices = @transform_18, window_bounds = array<i64: 1, 8, 32>}, {transform_indices = @transform_19, window_bounds = array<i64: 1, 8, 8>}]} {
    %c0 = arith.constant 0 : index
    %c0_0 = arith.constant 0 : index
    %c0_1 = arith.constant 0 : index
    %0 = vector.load %arg2[%c0, %c0_0, %c0_1] : memref<1x8x32xf32, #tpu.memory_space<vmem>>, vector<1x8x32xf32>
    %1 = vector.shape_cast %0 : vector<1x8x32xf32> to vector<8x32xf32>
    %c0_2 = arith.constant 0 : index
    %c0_3 = arith.constant 0 : index
    %2 = vector.load %arg1[%c0_2, %c0_3] : memref<8x32xf32, #tpu.memory_space<vmem>>, vector<8x32xf32>
    %3 = arith.addf %1, %2 : vector<8x32xf32>
    %cst = arith.constant 0.000000e+00 : f32
    %4 = vector.broadcast %cst : f32 to vector<8x32xf32>
    %cst_4 = arith.constant 0.000000e+00 : f32
    %5 = vector.broadcast %cst_4 : f32 to vector<8x8xf32>
    %c0_5 = arith.constant 0 : index
    %c0_6 = arith.constant 0 : index
    %c0_7 = arith.constant 0 : index
    %6 = vector.load %arg3[%c0_5, %c0_6, %c0_7] : memref<4x32x8xf32, #tpu.memory_space<vmem>>, vector<1x32x8xf32>
    %7 = vector.shape_cast %6 : vector<1x32x8xf32> to vector<32x8xf32>
    %cst_8 = arith.constant dense<0.000000e+00> : vector<8x8xf32>
    %8 = tpu.matmul %3, %7, %cst_8 {dimension_numbers = #tpu.dot_dimension_numbers<[1], [0], [0], [1], [0, 0, 1, 1], [], []>} : vector<8x32xf32>, vector<32x8xf32>, vector<8x8xf32> -> vector<8x8xf32>
    %c0_9 = arith.constant 0 : index
    %c0_10 = arith.constant 0 : index
    %c0_11 = arith.constant 0 : index
    %9 = vector.load %arg4[%c0_9, %c0_10, %c0_11] : memref<4x1x8xf32, #tpu.memory_space<vmem>>, vector<1x1x8xf32>
    %10 = vector.shape_cast %9 : vector<1x1x8xf32> to vector<1x8xf32>
    %11 = vector.broadcast %10 : vector<1x8xf32> to vector<8x8xf32>
    %12 = arith.addf %8, %11 : vector<8x8xf32>
    %c0_12 = arith.constant 0 : index
    %c0_13 = arith.constant 0 : index
    %c0_14 = arith.constant 0 : index
    %13 = vector.load %arg5[%c0_12, %c0_13, %c0_14] : memref<4x32x8xf32, #tpu.memory_space<vmem>>, vector<1x32x8xf32>
    %14 = vector.shape_cast %13 : vector<1x32x8xf32> to vector<32x8xf32>
    %cst_15 = arith.constant dense<0.000000e+00> : vector<8x8xf32>
    %15 = tpu.matmul %3, %14, %cst_15 {dimension_numbers = #tpu.dot_dimension_numbers<[1], [0], [0], [1], [0, 0, 1, 1], [], []>} : vector<8x32xf32>, vector<32x8xf32>, vector<8x8xf32> -> vector<8x8xf32>
    %c0_16 = arith.constant 0 : index
    %c0_17 = arith.constant 0 : index
    %c0_18 = arith.constant 0 : index
    %16 = vector.load %arg6[%c0_16, %c0_17, %c0_18] : memref<4x1x8xf32, #tpu.memory_space<vmem>>, vector<1x1x8xf32>
    %17 = vector.shape_cast %16 : vector<1x1x8xf32> to vector<1x8xf32>
    %18 = vector.broadcast %17 : vector<1x8xf32> to vector<8x8xf32>
    %19 = arith.addf %15, %18 : vector<8x8xf32>
    %c0_19 = arith.constant 0 : index
    %c0_20 = arith.constant 0 : index
    %c0_21 = arith.constant 0 : index
    %20 = vector.load %arg7[%c0_19, %c0_20, %c0_21] : memref<4x32x8xf32, #tpu.memory_space<vmem>>, vector<1x32x8xf32>
    %21 = vector.shape_cast %20 : vector<1x32x8xf32> to vector<32x8xf32>
    %cst_22 = arith.constant dense<0.000000e+00> : vector<8x8xf32>
    %22 = tpu.matmul %3, %21, %cst_22 {dimension_numbers = #tpu.dot_dimension_numbers<[1], [0], [0], [1], [0, 0, 1, 1], [], []>} : vector<8x32xf32>, vector<32x8xf32>, vector<8x8xf32> -> vector<8x8xf32>
    %c0_23 = arith.constant 0 : index
    %c0_24 = arith.constant 0 : index
    %c0_25 = arith.constant 0 : index
    %23 = vector.load %arg8[%c0_23, %c0_24, %c0_25] : memref<4x1x8xf32, #tpu.memory_space<vmem>>, vector<1x1x8xf32>
    %24 = vector.shape_cast %23 : vector<1x1x8xf32> to vector<1x8xf32>
    %25 = vector.broadcast %24 : vector<1x8xf32> to vector<8x8xf32>
    %26 = arith.addf %22, %25 : vector<8x8xf32>
    %cst_26 = arith.constant dense<0.000000e+00> : vector<8x8xf32>
    %27 = tpu.matmul %12, %19, %cst_26 {dimension_numbers = #tpu.dot_dimension_numbers<[1], [1], [0], [0], [0, 0, 1, 0], [], []>} : vector<8x8xf32>, vector<8x8xf32>, vector<8x8xf32> -> vector<8x8xf32>
    %cst_27 = arith.constant dense<0xFF800000> : vector<8xf32>
    %28 = vector.multi_reduction <maximumf>, %27, %cst_27 [1] : vector<8x8xf32> to vector<8xf32>
    %29 = vector.shape_cast %28 : vector<8xf32> to vector<8x1xf32>
    %30 = vector.broadcast %29 : vector<8x1xf32> to vector<8x8xf32>
    %31 = arith.subf %27, %30 : vector<8x8xf32>
    %32 = math.exp %31 : vector<8x8xf32>
    %cst_28 = arith.constant dense<0.000000e+00> : vector<8xf32>
    %33 = vector.multi_reduction <add>, %32, %cst_28 [1] : vector<8x8xf32> to vector<8xf32>
    %34 = vector.shape_cast %33 : vector<8xf32> to vector<8x1xf32>
    %35 = tpu.reciprocal %34 : vector<8x1xf32> -> vector<8x1xf32>
    %36 = vector.broadcast %35 : vector<8x1xf32> to vector<8x8xf32>
    %37 = arith.mulf %32, %36 : vector<8x8xf32>
    %38 = arith.addf %5, %37 : vector<8x8xf32>
    %cst_29 = arith.constant dense<0.000000e+00> : vector<8x8xf32>
    %39 = tpu.matmul %37, %26, %cst_29 {dimension_numbers = #tpu.dot_dimension_numbers<[1], [0], [0], [1], [0, 0, 1, 1], [], []>} : vector<8x8xf32>, vector<8x8xf32>, vector<8x8xf32> -> vector<8x8xf32>
    %c0_30 = arith.constant 0 : index
    %c0_31 = arith.constant 0 : index
    %c0_32 = arith.constant 0 : index
    %40 = vector.load %arg9[%c0_30, %c0_31, %c0_32] : memref<4x8x32xf32, #tpu.memory_space<vmem>>, vector<1x8x32xf32>
    %41 = vector.shape_cast %40 : vector<1x8x32xf32> to vector<8x32xf32>
    %cst_33 = arith.constant dense<0.000000e+00> : vector<8x32xf32>
    %42 = tpu.matmul %39, %41, %cst_33 {dimension_numbers = #tpu.dot_dimension_numbers<[1], [0], [0], [1], [0, 0, 1, 1], [], []>} : vector<8x8xf32>, vector<8x32xf32>, vector<8x32xf32> -> vector<8x32xf32>
    %43 = arith.addf %4, %42 : vector<8x32xf32>
    %c1 = arith.constant 1 : index
    %c0_34 = arith.constant 0 : index
    %c0_35 = arith.constant 0 : index
    %44 = vector.load %arg3[%c1, %c0_34, %c0_35] : memref<4x32x8xf32, #tpu.memory_space<vmem>>, vector<1x32x8xf32>
    %45 = vector.shape_cast %44 : vector<1x32x8xf32> to vector<32x8xf32>
    %cst_36 = arith.constant dense<0.000000e+00> : vector<8x8xf32>
    %46 = tpu.matmul %3, %45, %cst_36 {dimension_numbers = #tpu.dot_dimension_numbers<[1], [0], [0], [1], [0, 0, 1, 1], [], []>} : vector<8x32xf32>, vector<32x8xf32>, vector<8x8xf32> -> vector<8x8xf32>
    %c1_37 = arith.constant 1 : index
    %c0_38 = arith.constant 0 : index
    %c0_39 = arith.constant 0 : index
    %47 = vector.load %arg4[%c1_37, %c0_38, %c0_39] : memref<4x1x8xf32, #tpu.memory_space<vmem>>, vector<1x1x8xf32>
    %48 = vector.shape_cast %47 : vector<1x1x8xf32> to vector<1x8xf32>
    %49 = vector.broadcast %48 : vector<1x8xf32> to vector<8x8xf32>
    %50 = arith.addf %46, %49 : vector<8x8xf32>
    %c1_40 = arith.constant 1 : index
    %c0_41 = arith.constant 0 : index
    %c0_42 = arith.constant 0 : index
    %51 = vector.load %arg5[%c1_40, %c0_41, %c0_42] : memref<4x32x8xf32, #tpu.memory_space<vmem>>, vector<1x32x8xf32>
    %52 = vector.shape_cast %51 : vector<1x32x8xf32> to vector<32x8xf32>
    %cst_43 = arith.constant dense<0.000000e+00> : vector<8x8xf32>
    %53 = tpu.matmul %3, %52, %cst_43 {dimension_numbers = #tpu.dot_dimension_numbers<[1], [0], [0], [1], [0, 0, 1, 1], [], []>} : vector<8x32xf32>, vector<32x8xf32>, vector<8x8xf32> -> vector<8x8xf32>
    %c1_44 = arith.constant 1 : index
    %c0_45 = arith.constant 0 : index
    %c0_46 = arith.constant 0 : index
    %54 = vector.load %arg6[%c1_44, %c0_45, %c0_46] : memref<4x1x8xf32, #tpu.memory_space<vmem>>, vector<1x1x8xf32>
    %55 = vector.shape_cast %54 : vector<1x1x8xf32> to vector<1x8xf32>
    %56 = vector.broadcast %55 : vector<1x8xf32> to vector<8x8xf32>
    %57 = arith.addf %53, %56 : vector<8x8xf32>
    %c1_47 = arith.constant 1 : index
    %c0_48 = arith.constant 0 : index
    %c0_49 = arith.constant 0 : index
    %58 = vector.load %arg7[%c1_47, %c0_48, %c0_49] : memref<4x32x8xf32, #tpu.memory_space<vmem>>, vector<1x32x8xf32>
    %59 = vector.shape_cast %58 : vector<1x32x8xf32> to vector<32x8xf32>
    %cst_50 = arith.constant dense<0.000000e+00> : vector<8x8xf32>
    %60 = tpu.matmul %3, %59, %cst_50 {dimension_numbers = #tpu.dot_dimension_numbers<[1], [0], [0], [1], [0, 0, 1, 1], [], []>} : vector<8x32xf32>, vector<32x8xf32>, vector<8x8xf32> -> vector<8x8xf32>
    %c1_51 = arith.constant 1 : index
    %c0_52 = arith.constant 0 : index
    %c0_53 = arith.constant 0 : index
    %61 = vector.load %arg8[%c1_51, %c0_52, %c0_53] : memref<4x1x8xf32, #tpu.memory_space<vmem>>, vector<1x1x8xf32>
    %62 = vector.shape_cast %61 : vector<1x1x8xf32> to vector<1x8xf32>
    %63 = vector.broadcast %62 : vector<1x8xf32> to vector<8x8xf32>
    %64 = arith.addf %60, %63 : vector<8x8xf32>
    %cst_54 = arith.constant dense<0.000000e+00> : vector<8x8xf32>
    %65 = tpu.matmul %50, %57, %cst_54 {dimension_numbers = #tpu.dot_dimension_numbers<[1], [1], [0], [0], [0, 0, 1, 0], [], []>} : vector<8x8xf32>, vector<8x8xf32>, vector<8x8xf32> -> vector<8x8xf32>
    %cst_55 = arith.constant dense<0xFF800000> : vector<8xf32>
    %66 = vector.multi_reduction <maximumf>, %65, %cst_55 [1] : vector<8x8xf32> to vector<8xf32>
    %67 = vector.shape_cast %66 : vector<8xf32> to vector<8x1xf32>
    %68 = vector.broadcast %67 : vector<8x1xf32> to vector<8x8xf32>
    %69 = arith.subf %65, %68 : vector<8x8xf32>
    %70 = math.exp %69 : vector<8x8xf32>
    %cst_56 = arith.constant dense<0.000000e+00> : vector<8xf32>
    %71 = vector.multi_reduction <add>, %70, %cst_56 [1] : vector<8x8xf32> to vector<8xf32>
    %72 = vector.shape_cast %71 : vector<8xf32> to vector<8x1xf32>
    %73 = tpu.reciprocal %72 : vector<8x1xf32> -> vector<8x1xf32>
    %74 = vector.broadcast %73 : vector<8x1xf32> to vector<8x8xf32>
    %75 = arith.mulf %70, %74 : vector<8x8xf32>
    %76 = arith.addf %38, %75 : vector<8x8xf32>
    %cst_57 = arith.constant dense<0.000000e+00> : vector<8x8xf32>
    %77 = tpu.matmul %75, %64, %cst_57 {dimension_numbers = #tpu.dot_dimension_numbers<[1], [0], [0], [1], [0, 0, 1, 1], [], []>} : vector<8x8xf32>, vector<8x8xf32>, vector<8x8xf32> -> vector<8x8xf32>
    %c1_58 = arith.constant 1 : index
    %c0_59 = arith.constant 0 : index
    %c0_60 = arith.constant 0 : index
    %78 = vector.load %arg9[%c1_58, %c0_59, %c0_60] : memref<4x8x32xf32, #tpu.memory_space<vmem>>, vector<1x8x32xf32>
    %79 = vector.shape_cast %78 : vector<1x8x32xf32> to vector<8x32xf32>
    %cst_61 = arith.constant dense<0.000000e+00> : vector<8x32xf32>
    %80 = tpu.matmul %77, %79, %cst_61 {dimension_numbers = #tpu.dot_dimension_numbers<[1], [0], [0], [1], [0, 0, 1, 1], [], []>} : vector<8x8xf32>, vector<8x32xf32>, vector<8x32xf32> -> vector<8x32xf32>
    %81 = arith.addf %43, %80 : vector<8x32xf32>
    %c2 = arith.constant 2 : index
    %c0_62 = arith.constant 0 : index
    %c0_63 = arith.constant 0 : index
    %82 = vector.load %arg3[%c2, %c0_62, %c0_63] : memref<4x32x8xf32, #tpu.memory_space<vmem>>, vector<1x32x8xf32>
    %83 = vector.shape_cast %82 : vector<1x32x8xf32> to vector<32x8xf32>
    %cst_64 = arith.constant dense<0.000000e+00> : vector<8x8xf32>
    %84 = tpu.matmul %3, %83, %cst_64 {dimension_numbers = #tpu.dot_dimension_numbers<[1], [0], [0], [1], [0, 0, 1, 1], [], []>} : vector<8x32xf32>, vector<32x8xf32>, vector<8x8xf32> -> vector<8x8xf32>
    %c2_65 = arith.constant 2 : index
    %c0_66 = arith.constant 0 : index
    %c0_67 = arith.constant 0 : index
    %85 = vector.load %arg4[%c2_65, %c0_66, %c0_67] : memref<4x1x8xf32, #tpu.memory_space<vmem>>, vector<1x1x8xf32>
    %86 = vector.shape_cast %85 : vector<1x1x8xf32> to vector<1x8xf32>
    %87 = vector.broadcast %86 : vector<1x8xf32> to vector<8x8xf32>
    %88 = arith.addf %84, %87 : vector<8x8xf32>
    %c2_68 = arith.constant 2 : index
    %c0_69 = arith.constant 0 : index
    %c0_70 = arith.constant 0 : index
    %89 = vector.load %arg5[%c2_68, %c0_69, %c0_70] : memref<4x32x8xf32, #tpu.memory_space<vmem>>, vector<1x32x8xf32>
    %90 = vector.shape_cast %89 : vector<1x32x8xf32> to vector<32x8xf32>
    %cst_71 = arith.constant dense<0.000000e+00> : vector<8x8xf32>
    %91 = tpu.matmul %3, %90, %cst_71 {dimension_numbers = #tpu.dot_dimension_numbers<[1], [0], [0], [1], [0, 0, 1, 1], [], []>} : vector<8x32xf32>, vector<32x8xf32>, vector<8x8xf32> -> vector<8x8xf32>
    %c2_72 = arith.constant 2 : index
    %c0_73 = arith.constant 0 : index
    %c0_74 = arith.constant 0 : index
    %92 = vector.load %arg6[%c2_72, %c0_73, %c0_74] : memref<4x1x8xf32, #tpu.memory_space<vmem>>, vector<1x1x8xf32>
    %93 = vector.shape_cast %92 : vector<1x1x8xf32> to vector<1x8xf32>
    %94 = vector.broadcast %93 : vector<1x8xf32> to vector<8x8xf32>
    %95 = arith.addf %91, %94 : vector<8x8xf32>
    %c2_75 = arith.constant 2 : index
    %c0_76 = arith.constant 0 : index
    %c0_77 = arith.constant 0 : index
    %96 = vector.load %arg7[%c2_75, %c0_76, %c0_77] : memref<4x32x8xf32, #tpu.memory_space<vmem>>, vector<1x32x8xf32>
    %97 = vector.shape_cast %96 : vector<1x32x8xf32> to vector<32x8xf32>
    %cst_78 = arith.constant dense<0.000000e+00> : vector<8x8xf32>
    %98 = tpu.matmul %3, %97, %cst_78 {dimension_numbers = #tpu.dot_dimension_numbers<[1], [0], [0], [1], [0, 0, 1, 1], [], []>} : vector<8x32xf32>, vector<32x8xf32>, vector<8x8xf32> -> vector<8x8xf32>
    %c2_79 = arith.constant 2 : index
    %c0_80 = arith.constant 0 : index
    %c0_81 = arith.constant 0 : index
    %99 = vector.load %arg8[%c2_79, %c0_80, %c0_81] : memref<4x1x8xf32, #tpu.memory_space<vmem>>, vector<1x1x8xf32>
    %100 = vector.shape_cast %99 : vector<1x1x8xf32> to vector<1x8xf32>
    %101 = vector.broadcast %100 : vector<1x8xf32> to vector<8x8xf32>
    %102 = arith.addf %98, %101 : vector<8x8xf32>
    %cst_82 = arith.constant dense<0.000000e+00> : vector<8x8xf32>
    %103 = tpu.matmul %88, %95, %cst_82 {dimension_numbers = #tpu.dot_dimension_numbers<[1], [1], [0], [0], [0, 0, 1, 0], [], []>} : vector<8x8xf32>, vector<8x8xf32>, vector<8x8xf32> -> vector<8x8xf32>
    %cst_83 = arith.constant dense<0xFF800000> : vector<8xf32>
    %104 = vector.multi_reduction <maximumf>, %103, %cst_83 [1] : vector<8x8xf32> to vector<8xf32>
    %105 = vector.shape_cast %104 : vector<8xf32> to vector<8x1xf32>
    %106 = vector.broadcast %105 : vector<8x1xf32> to vector<8x8xf32>
    %107 = arith.subf %103, %106 : vector<8x8xf32>
    %108 = math.exp %107 : vector<8x8xf32>
    %cst_84 = arith.constant dense<0.000000e+00> : vector<8xf32>
    %109 = vector.multi_reduction <add>, %108, %cst_84 [1] : vector<8x8xf32> to vector<8xf32>
    %110 = vector.shape_cast %109 : vector<8xf32> to vector<8x1xf32>
    %111 = tpu.reciprocal %110 : vector<8x1xf32> -> vector<8x1xf32>
    %112 = vector.broadcast %111 : vector<8x1xf32> to vector<8x8xf32>
    %113 = arith.mulf %108, %112 : vector<8x8xf32>
    %114 = arith.addf %76, %113 : vector<8x8xf32>
    %cst_85 = arith.constant dense<0.000000e+00> : vector<8x8xf32>
    %115 = tpu.matmul %113, %102, %cst_85 {dimension_numbers = #tpu.dot_dimension_numbers<[1], [0], [0], [1], [0, 0, 1, 1], [], []>} : vector<8x8xf32>, vector<8x8xf32>, vector<8x8xf32> -> vector<8x8xf32>
    %c2_86 = arith.constant 2 : index
    %c0_87 = arith.constant 0 : index
    %c0_88 = arith.constant 0 : index
    %116 = vector.load %arg9[%c2_86, %c0_87, %c0_88] : memref<4x8x32xf32, #tpu.memory_space<vmem>>, vector<1x8x32xf32>
    %117 = vector.shape_cast %116 : vector<1x8x32xf32> to vector<8x32xf32>
    %cst_89 = arith.constant dense<0.000000e+00> : vector<8x32xf32>
    %118 = tpu.matmul %115, %117, %cst_89 {dimension_numbers = #tpu.dot_dimension_numbers<[1], [0], [0], [1], [0, 0, 1, 1], [], []>} : vector<8x8xf32>, vector<8x32xf32>, vector<8x32xf32> -> vector<8x32xf32>
    %119 = arith.addf %81, %118 : vector<8x32xf32>
    %c3 = arith.constant 3 : index
    %c0_90 = arith.constant 0 : index
    %c0_91 = arith.constant 0 : index
    %120 = vector.load %arg3[%c3, %c0_90, %c0_91] : memref<4x32x8xf32, #tpu.memory_space<vmem>>, vector<1x32x8xf32>
    %121 = vector.shape_cast %120 : vector<1x32x8xf32> to vector<32x8xf32>
    %cst_92 = arith.constant dense<0.000000e+00> : vector<8x8xf32>
    %122 = tpu.matmul %3, %121, %cst_92 {dimension_numbers = #tpu.dot_dimension_numbers<[1], [0], [0], [1], [0, 0, 1, 1], [], []>} : vector<8x32xf32>, vector<32x8xf32>, vector<8x8xf32> -> vector<8x8xf32>
    %c3_93 = arith.constant 3 : index
    %c0_94 = arith.constant 0 : index
    %c0_95 = arith.constant 0 : index
    %123 = vector.load %arg4[%c3_93, %c0_94, %c0_95] : memref<4x1x8xf32, #tpu.memory_space<vmem>>, vector<1x1x8xf32>
    %124 = vector.shape_cast %123 : vector<1x1x8xf32> to vector<1x8xf32>
    %125 = vector.broadcast %124 : vector<1x8xf32> to vector<8x8xf32>
    %126 = arith.addf %122, %125 : vector<8x8xf32>
    %c3_96 = arith.constant 3 : index
    %c0_97 = arith.constant 0 : index
    %c0_98 = arith.constant 0 : index
    %127 = vector.load %arg5[%c3_96, %c0_97, %c0_98] : memref<4x32x8xf32, #tpu.memory_space<vmem>>, vector<1x32x8xf32>
    %128 = vector.shape_cast %127 : vector<1x32x8xf32> to vector<32x8xf32>
    %cst_99 = arith.constant dense<0.000000e+00> : vector<8x8xf32>
    %129 = tpu.matmul %3, %128, %cst_99 {dimension_numbers = #tpu.dot_dimension_numbers<[1], [0], [0], [1], [0, 0, 1, 1], [], []>} : vector<8x32xf32>, vector<32x8xf32>, vector<8x8xf32> -> vector<8x8xf32>
    %c3_100 = arith.constant 3 : index
    %c0_101 = arith.constant 0 : index
    %c0_102 = arith.constant 0 : index
    %130 = vector.load %arg6[%c3_100, %c0_101, %c0_102] : memref<4x1x8xf32, #tpu.memory_space<vmem>>, vector<1x1x8xf32>
    %131 = vector.shape_cast %130 : vector<1x1x8xf32> to vector<1x8xf32>
    %132 = vector.broadcast %131 : vector<1x8xf32> to vector<8x8xf32>
    %133 = arith.addf %129, %132 : vector<8x8xf32>
    %c3_103 = arith.constant 3 : index
    %c0_104 = arith.constant 0 : index
    %c0_105 = arith.constant 0 : index
    %134 = vector.load %arg7[%c3_103, %c0_104, %c0_105] : memref<4x32x8xf32, #tpu.memory_space<vmem>>, vector<1x32x8xf32>
    %135 = vector.shape_cast %134 : vector<1x32x8xf32> to vector<32x8xf32>
    %cst_106 = arith.constant dense<0.000000e+00> : vector<8x8xf32>
    %136 = tpu.matmul %3, %135, %cst_106 {dimension_numbers = #tpu.dot_dimension_numbers<[1], [0], [0], [1], [0, 0, 1, 1], [], []>} : vector<8x32xf32>, vector<32x8xf32>, vector<8x8xf32> -> vector<8x8xf32>
    %c3_107 = arith.constant 3 : index
    %c0_108 = arith.constant 0 : index
    %c0_109 = arith.constant 0 : index
    %137 = vector.load %arg8[%c3_107, %c0_108, %c0_109] : memref<4x1x8xf32, #tpu.memory_space<vmem>>, vector<1x1x8xf32>
    %138 = vector.shape_cast %137 : vector<1x1x8xf32> to vector<1x8xf32>
    %139 = vector.broadcast %138 : vector<1x8xf32> to vector<8x8xf32>
    %140 = arith.addf %136, %139 : vector<8x8xf32>
    %cst_110 = arith.constant dense<0.000000e+00> : vector<8x8xf32>
    %141 = tpu.matmul %126, %133, %cst_110 {dimension_numbers = #tpu.dot_dimension_numbers<[1], [1], [0], [0], [0, 0, 1, 0], [], []>} : vector<8x8xf32>, vector<8x8xf32>, vector<8x8xf32> -> vector<8x8xf32>
    %cst_111 = arith.constant dense<0xFF800000> : vector<8xf32>
    %142 = vector.multi_reduction <maximumf>, %141, %cst_111 [1] : vector<8x8xf32> to vector<8xf32>
    %143 = vector.shape_cast %142 : vector<8xf32> to vector<8x1xf32>
    %144 = vector.broadcast %143 : vector<8x1xf32> to vector<8x8xf32>
    %145 = arith.subf %141, %144 : vector<8x8xf32>
    %146 = math.exp %145 : vector<8x8xf32>
    %cst_112 = arith.constant dense<0.000000e+00> : vector<8xf32>
    %147 = vector.multi_reduction <add>, %146, %cst_112 [1] : vector<8x8xf32> to vector<8xf32>
    %148 = vector.shape_cast %147 : vector<8xf32> to vector<8x1xf32>
    %149 = tpu.reciprocal %148 : vector<8x1xf32> -> vector<8x1xf32>
    %150 = vector.broadcast %149 : vector<8x1xf32> to vector<8x8xf32>
    %151 = arith.mulf %146, %150 : vector<8x8xf32>
    %152 = arith.addf %114, %151 : vector<8x8xf32>
    %cst_113 = arith.constant dense<0.000000e+00> : vector<8x8xf32>
    %153 = tpu.matmul %151, %140, %cst_113 {dimension_numbers = #tpu.dot_dimension_numbers<[1], [0], [0], [1], [0, 0, 1, 1], [], []>} : vector<8x8xf32>, vector<8x8xf32>, vector<8x8xf32> -> vector<8x8xf32>
    %c3_114 = arith.constant 3 : index
    %c0_115 = arith.constant 0 : index
    %c0_116 = arith.constant 0 : index
    %154 = vector.load %arg9[%c3_114, %c0_115, %c0_116] : memref<4x8x32xf32, #tpu.memory_space<vmem>>, vector<1x8x32xf32>
    %155 = vector.shape_cast %154 : vector<1x8x32xf32> to vector<8x32xf32>
    %cst_117 = arith.constant dense<0.000000e+00> : vector<8x32xf32>
    %156 = tpu.matmul %153, %155, %cst_117 {dimension_numbers = #tpu.dot_dimension_numbers<[1], [0], [0], [1], [0, 0, 1, 1], [], []>} : vector<8x8xf32>, vector<8x32xf32>, vector<8x32xf32> -> vector<8x32xf32>
    %157 = arith.addf %119, %156 : vector<8x32xf32>
    %c0_118 = arith.constant 0 : index
    %c0_119 = arith.constant 0 : index
    %158 = vector.load %arg10[%c0_118, %c0_119] : memref<1x32xf32, #tpu.memory_space<vmem>>, vector<1x32xf32>
    %159 = vector.broadcast %158 : vector<1x32xf32> to vector<8x32xf32>
    %160 = arith.addf %157, %159 : vector<8x32xf32>
    %161 = arith.addf %3, %160 : vector<8x32xf32>
    %c0_120 = arith.constant 0 : index
    %c0_121 = arith.constant 0 : index
    %162 = vector.load %arg11[%c0_120, %c0_121] : memref<1x32xf32, #tpu.memory_space<vmem>>, vector<1x32xf32>
    %c0_122 = arith.constant 0 : index
    %c0_123 = arith.constant 0 : index
    %163 = vector.load %arg12[%c0_122, %c0_123] : memref<1x32xf32, #tpu.memory_space<vmem>>, vector<1x32xf32>
    %cst_124 = arith.constant dense<0.000000e+00> : vector<8xf32>
    %164 = vector.multi_reduction <add>, %161, %cst_124 [1] : vector<8x32xf32> to vector<8xf32>
    %165 = vector.shape_cast %164 : vector<8xf32> to vector<8x1xf32>
    %cst_125 = arith.constant 3.200000e+01 : f32
    %166 = vector.broadcast %cst_125 : f32 to vector<8x1xf32>
    %167 = arith.divf %165, %166 : vector<8x1xf32>
    %168 = vector.broadcast %167 : vector<8x1xf32> to vector<8x32xf32>
    %169 = arith.subf %161, %168 : vector<8x32xf32>
    %170 = arith.mulf %169, %169 : vector<8x32xf32>
    %cst_126 = arith.constant dense<0.000000e+00> : vector<8xf32>
    %171 = vector.multi_reduction <add>, %170, %cst_126 [1] : vector<8x32xf32> to vector<8xf32>
    %172 = vector.shape_cast %171 : vector<8xf32> to vector<8x1xf32>
    %cst_127 = arith.constant 3.200000e+01 : f32
    %173 = vector.broadcast %cst_127 : f32 to vector<8x1xf32>
    %174 = arith.divf %172, %173 : vector<8x1xf32>
    %cst_128 = arith.constant 9.99999974E-6 : f32
    %175 = vector.broadcast %cst_128 : f32 to vector<8x1xf32>
    %176 = arith.addf %174, %175 : vector<8x1xf32>
    %177 = math.rsqrt %176 : vector<8x1xf32>
    %178 = vector.broadcast %177 : vector<8x1xf32> to vector<8x32xf32>
    %179 = arith.mulf %169, %178 : vector<8x32xf32>
    %180 = vector.broadcast %162 : vector<1x32xf32> to vector<8x32xf32>
    %181 = arith.mulf %179, %180 : vector<8x32xf32>
    %182 = vector.broadcast %163 : vector<1x32xf32> to vector<8x32xf32>
    %183 = arith.addf %181, %182 : vector<8x32xf32>
    %c0_129 = arith.constant 0 : index
    %c0_130 = arith.constant 0 : index
    %184 = vector.load %arg13[%c0_129, %c0_130] : memref<32x64xf32, #tpu.memory_space<vmem>>, vector<32x64xf32>
    %cst_131 = arith.constant dense<0.000000e+00> : vector<8x64xf32>
    %185 = tpu.matmul %183, %184, %cst_131 {dimension_numbers = #tpu.dot_dimension_numbers<[1], [0], [0], [1], [0, 0, 1, 1], [], []>} : vector<8x32xf32>, vector<32x64xf32>, vector<8x64xf32> -> vector<8x64xf32>
    %c0_132 = arith.constant 0 : index
    %c0_133 = arith.constant 0 : index
    %186 = vector.load %arg14[%c0_132, %c0_133] : memref<1x64xf32, #tpu.memory_space<vmem>>, vector<1x64xf32>
    %187 = vector.broadcast %186 : vector<1x64xf32> to vector<8x64xf32>
    %188 = arith.addf %185, %187 : vector<8x64xf32>
    %cst_134 = arith.constant 0.000000e+00 : f32
    %189 = vector.broadcast %cst_134 : f32 to vector<8x64xf32>
    %190 = arith.maximumf %188, %189 : vector<8x64xf32>
    %c0_135 = arith.constant 0 : index
    %c0_136 = arith.constant 0 : index
    %191 = vector.load %arg15[%c0_135, %c0_136] : memref<64x32xf32, #tpu.memory_space<vmem>>, vector<64x32xf32>
    %cst_137 = arith.constant dense<0.000000e+00> : vector<8x32xf32>
    %192 = tpu.matmul %190, %191, %cst_137 {dimension_numbers = #tpu.dot_dimension_numbers<[1], [0], [0], [1], [0, 0, 1, 1], [], []>} : vector<8x64xf32>, vector<64x32xf32>, vector<8x32xf32> -> vector<8x32xf32>
    %c0_138 = arith.constant 0 : index
    %c0_139 = arith.constant 0 : index
    %193 = vector.load %arg16[%c0_138, %c0_139] : memref<1x32xf32, #tpu.memory_space<vmem>>, vector<1x32xf32>
    %194 = vector.broadcast %193 : vector<1x32xf32> to vector<8x32xf32>
    %195 = arith.addf %192, %194 : vector<8x32xf32>
    %196 = arith.addf %183, %195 : vector<8x32xf32>
    %c0_140 = arith.constant 0 : index
    %c0_141 = arith.constant 0 : index
    %197 = vector.load %arg17[%c0_140, %c0_141] : memref<1x32xf32, #tpu.memory_space<vmem>>, vector<1x32xf32>
    %c0_142 = arith.constant 0 : index
    %c0_143 = arith.constant 0 : index
    %198 = vector.load %arg18[%c0_142, %c0_143] : memref<1x32xf32, #tpu.memory_space<vmem>>, vector<1x32xf32>
    %cst_144 = arith.constant dense<0.000000e+00> : vector<8xf32>
    %199 = vector.multi_reduction <add>, %196, %cst_144 [1] : vector<8x32xf32> to vector<8xf32>
    %200 = vector.shape_cast %199 : vector<8xf32> to vector<8x1xf32>
    %cst_145 = arith.constant 3.200000e+01 : f32
    %201 = vector.broadcast %cst_145 : f32 to vector<8x1xf32>
    %202 = arith.divf %200, %201 : vector<8x1xf32>
    %203 = vector.broadcast %202 : vector<8x1xf32> to vector<8x32xf32>
    %204 = arith.subf %196, %203 : vector<8x32xf32>
    %205 = arith.mulf %204, %204 : vector<8x32xf32>
    %cst_146 = arith.constant dense<0.000000e+00> : vector<8xf32>
    %206 = vector.multi_reduction <add>, %205, %cst_146 [1] : vector<8x32xf32> to vector<8xf32>
    %207 = vector.shape_cast %206 : vector<8xf32> to vector<8x1xf32>
    %cst_147 = arith.constant 3.200000e+01 : f32
    %208 = vector.broadcast %cst_147 : f32 to vector<8x1xf32>
    %209 = arith.divf %207, %208 : vector<8x1xf32>
    %cst_148 = arith.constant 9.99999974E-6 : f32
    %210 = vector.broadcast %cst_148 : f32 to vector<8x1xf32>
    %211 = arith.addf %209, %210 : vector<8x1xf32>
    %212 = math.rsqrt %211 : vector<8x1xf32>
    %213 = vector.broadcast %212 : vector<8x1xf32> to vector<8x32xf32>
    %214 = arith.mulf %204, %213 : vector<8x32xf32>
    %215 = vector.broadcast %197 : vector<1x32xf32> to vector<8x32xf32>
    %216 = arith.mulf %214, %215 : vector<8x32xf32>
    %217 = vector.broadcast %198 : vector<1x32xf32> to vector<8x32xf32>
    %218 = arith.addf %216, %217 : vector<8x32xf32>
    %cst_149 = arith.constant 2.500000e-01 : f32
    %219 = vector.broadcast %cst_149 : f32 to vector<8x8xf32>
    %220 = arith.mulf %152, %219 : vector<8x8xf32>
    %c0_150 = arith.constant 0 : index
    %c0_151 = arith.constant 0 : index
    %c0_152 = arith.constant 0 : index
    %221 = vector.load %arg20[%c0_150, %c0_151, %c0_152] : memref<1x8x8xf32, #tpu.memory_space<vmem>>, vector<1x8x8xf32>
    %222 = vector.shape_cast %221 : vector<1x8x8xf32> to vector<8x8xf32>
    %223 = vector.shape_cast %220 : vector<8x8xf32> to vector<1x8x8xf32>
    tpu.vector_store %arg20[%c0_150, %c0_151, %c0_152], %223 {strides = array<i32>} : memref<1x8x8xf32, #tpu.memory_space<vmem>>, vector<1x8x8xf32>,
    %cst_153 = arith.constant 0.000000e+00 : f32
    %224 = vector.broadcast %cst_153 : f32 to vector<8x32xf32>
    %c0_154 = arith.constant 0 : index
    %c0_155 = arith.constant 0 : index
    %c0_156 = arith.constant 0 : index
    %225 = vector.load %arg3[%c0_154, %c0_155, %c0_156] : memref<4x32x8xf32, #tpu.memory_space<vmem>>, vector<1x32x8xf32>
    %226 = vector.shape_cast %225 : vector<1x32x8xf32> to vector<32x8xf32>
    %cst_157 = arith.constant dense<0.000000e+00> : vector<8x8xf32>
    %227 = tpu.matmul %218, %226, %cst_157 {dimension_numbers = #tpu.dot_dimension_numbers<[1], [0], [0], [1], [0, 0, 1, 1], [], []>} : vector<8x32xf32>, vector<32x8xf32>, vector<8x8xf32> -> vector<8x8xf32>
    %c0_158 = arith.constant 0 : index
    %c0_159 = arith.constant 0 : index
    %c0_160 = arith.constant 0 : index
    %228 = vector.load %arg4[%c0_158, %c0_159, %c0_160] : memref<4x1x8xf32, #tpu.memory_space<vmem>>, vector<1x1x8xf32>
    %229 = vector.shape_cast %228 : vector<1x1x8xf32> to vector<1x8xf32>
    %230 = vector.broadcast %229 : vector<1x8xf32> to vector<8x8xf32>
    %231 = arith.addf %227, %230 : vector<8x8xf32>
    %c0_161 = arith.constant 0 : index
    %c0_162 = arith.constant 0 : index
    %c0_163 = arith.constant 0 : index
    %232 = vector.load %arg5[%c0_161, %c0_162, %c0_163] : memref<4x32x8xf32, #tpu.memory_space<vmem>>, vector<1x32x8xf32>
    %233 = vector.shape_cast %232 : vector<1x32x8xf32> to vector<32x8xf32>
    %cst_164 = arith.constant dense<0.000000e+00> : vector<8x8xf32>
    %234 = tpu.matmul %218, %233, %cst_164 {dimension_numbers = #tpu.dot_dimension_numbers<[1], [0], [0], [1], [0, 0, 1, 1], [], []>} : vector<8x32xf32>, vector<32x8xf32>, vector<8x8xf32> -> vector<8x8xf32>
    %c0_165 = arith.constant 0 : index
    %c0_166 = arith.constant 0 : index
    %c0_167 = arith.constant 0 : index
    %235 = vector.load %arg6[%c0_165, %c0_166, %c0_167] : memref<4x1x8xf32, #tpu.memory_space<vmem>>, vector<1x1x8xf32>
    %236 = vector.shape_cast %235 : vector<1x1x8xf32> to vector<1x8xf32>
    %237 = vector.broadcast %236 : vector<1x8xf32> to vector<8x8xf32>
    %238 = arith.addf %234, %237 : vector<8x8xf32>
    %c0_168 = arith.constant 0 : index
    %c0_169 = arith.constant 0 : index
    %c0_170 = arith.constant 0 : index
    %239 = vector.load %arg7[%c0_168, %c0_169, %c0_170] : memref<4x32x8xf32, #tpu.memory_space<vmem>>, vector<1x32x8xf32>
    %240 = vector.shape_cast %239 : vector<1x32x8xf32> to vector<32x8xf32>
    %cst_171 = arith.constant dense<0.000000e+00> : vector<8x8xf32>
    %241 = tpu.matmul %218, %240, %cst_171 {dimension_numbers = #tpu.dot_dimension_numbers<[1], [0], [0], [1], [0, 0, 1, 1], [], []>} : vector<8x32xf32>, vector<32x8xf32>, vector<8x8xf32> -> vector<8x8xf32>
    %c0_172 = arith.constant 0 : index
    %c0_173 = arith.constant 0 : index
    %c0_174 = arith.constant 0 : index
    %242 = vector.load %arg8[%c0_172, %c0_173, %c0_174] : memref<4x1x8xf32, #tpu.memory_space<vmem>>, vector<1x1x8xf32>
    %243 = vector.shape_cast %242 : vector<1x1x8xf32> to vector<1x8xf32>
    %244 = vector.broadcast %243 : vector<1x8xf32> to vector<8x8xf32>
    %245 = arith.addf %241, %244 : vector<8x8xf32>
    %cst_175 = arith.constant dense<0.000000e+00> : vector<8x8xf32>
    %246 = tpu.matmul %231, %238, %cst_175 {dimension_numbers = #tpu.dot_dimension_numbers<[1], [1], [0], [0], [0, 0, 1, 0], [], []>} : vector<8x8xf32>, vector<8x8xf32>, vector<8x8xf32> -> vector<8x8xf32>
    %cst_176 = arith.constant dense<0xFF800000> : vector<8xf32>
    %247 = vector.multi_reduction <maximumf>, %246, %cst_176 [1] : vector<8x8xf32> to vector<8xf32>
    %248 = vector.shape_cast %247 : vector<8xf32> to vector<8x1xf32>
    %249 = vector.broadcast %248 : vector<8x1xf32> to vector<8x8xf32>
    %250 = arith.subf %246, %249 : vector<8x8xf32>
    %251 = math.exp %250 : vector<8x8xf32>
    %cst_177 = arith.constant dense<0.000000e+00> : vector<8xf32>
    %252 = vector.multi_reduction <add>, %251, %cst_177 [1] : vector<8x8xf32> to vector<8xf32>
    %253 = vector.shape_cast %252 : vector<8xf32> to vector<8x1xf32>
    %254 = tpu.reciprocal %253 : vector<8x1xf32> -> vector<8x1xf32>
    %255 = vector.broadcast %254 : vector<8x1xf32> to vector<8x8xf32>
    %256 = arith.mulf %251, %255 : vector<8x8xf32>
    %cst_178 = arith.constant dense<0.000000e+00> : vector<8x8xf32>
    %257 = tpu.matmul %256, %245, %cst_178 {dimension_numbers = #tpu.dot_dimension_numbers<[1], [0], [0], [1], [0, 0, 1, 1], [], []>} : vector<8x8xf32>, vector<8x8xf32>, vector<8x8xf32> -> vector<8x8xf32>
    %c0_179 = arith.constant 0 : index
    %c0_180 = arith.constant 0 : index
    %c0_181 = arith.constant 0 : index
    %258 = vector.load %arg9[%c0_179, %c0_180, %c0_181] : memref<4x8x32xf32, #tpu.memory_space<vmem>>, vector<1x8x32xf32>
    %259 = vector.shape_cast %258 : vector<1x8x32xf32> to vector<8x32xf32>
    %cst_182 = arith.constant dense<0.000000e+00> : vector<8x32xf32>
    %260 = tpu.matmul %257, %259, %cst_182 {dimension_numbers = #tpu.dot_dimension_numbers<[1], [0], [0], [1], [0, 0, 1, 1], [], []>} : vector<8x8xf32>, vector<8x32xf32>, vector<8x32xf32> -> vector<8x32xf32>
    %261 = arith.addf %224, %260 : vector<8x32xf32>
    %c1_183 = arith.constant 1 : index
    %c0_184 = arith.constant 0 : index
    %c0_185 = arith.constant 0 : index
    %262 = vector.load %arg3[%c1_183, %c0_184, %c0_185] : memref<4x32x8xf32, #tpu.memory_space<vmem>>, vector<1x32x8xf32>
    %263 = vector.shape_cast %262 : vector<1x32x8xf32> to vector<32x8xf32>
    %cst_186 = arith.constant dense<0.000000e+00> : vector<8x8xf32>
    %264 = tpu.matmul %218, %263, %cst_186 {dimension_numbers = #tpu.dot_dimension_numbers<[1], [0], [0], [1], [0, 0, 1, 1], [], []>} : vector<8x32xf32>, vector<32x8xf32>, vector<8x8xf32> -> vector<8x8xf32>
    %c1_187 = arith.constant 1 : index
    %c0_188 = arith.constant 0 : index
    %c0_189 = arith.constant 0 : index
    %265 = vector.load %arg4[%c1_187, %c0_188, %c0_189] : memref<4x1x8xf32, #tpu.memory_space<vmem>>, vector<1x1x8xf32>
    %266 = vector.shape_cast %265 : vector<1x1x8xf32> to vector<1x8xf32>
    %267 = vector.broadcast %266 : vector<1x8xf32> to vector<8x8xf32>
    %268 = arith.addf %264, %267 : vector<8x8xf32>
    %c1_190 = arith.constant 1 : index
    %c0_191 = arith.constant 0 : index
    %c0_192 = arith.constant 0 : index
    %269 = vector.load %arg5[%c1_190, %c0_191, %c0_192] : memref<4x32x8xf32, #tpu.memory_space<vmem>>, vector<1x32x8xf32>
    %270 = vector.shape_cast %269 : vector<1x32x8xf32> to vector<32x8xf32>
    %cst_193 = arith.constant dense<0.000000e+00> : vector<8x8xf32>
    %271 = tpu.matmul %218, %270, %cst_193 {dimension_numbers = #tpu.dot_dimension_numbers<[1], [0], [0], [1], [0, 0, 1, 1], [], []>} : vector<8x32xf32>, vector<32x8xf32>, vector<8x8xf32> -> vector<8x8xf32>
    %c1_194 = arith.constant 1 : index
    %c0_195 = arith.constant 0 : index
    %c0_196 = arith.constant 0 : index
    %272 = vector.load %arg6[%c1_194, %c0_195, %c0_196] : memref<4x1x8xf32, #tpu.memory_space<vmem>>, vector<1x1x8xf32>
    %273 = vector.shape_cast %272 : vector<1x1x8xf32> to vector<1x8xf32>
    %274 = vector.broadcast %273 : vector<1x8xf32> to vector<8x8xf32>
    %275 = arith.addf %271, %274 : vector<8x8xf32>
    %c1_197 = arith.constant 1 : index
    %c0_198 = arith.constant 0 : index
    %c0_199 = arith.constant 0 : index
    %276 = vector.load %arg7[%c1_197, %c0_198, %c0_199] : memref<4x32x8xf32, #tpu.memory_space<vmem>>, vector<1x32x8xf32>
    %277 = vector.shape_cast %276 : vector<1x32x8xf32> to vector<32x8xf32>
    %cst_200 = arith.constant dense<0.000000e+00> : vector<8x8xf32>
    %278 = tpu.matmul %218, %277, %cst_200 {dimension_numbers = #tpu.dot_dimension_numbers<[1], [0], [0], [1], [0, 0, 1, 1], [], []>} : vector<8x32xf32>, vector<32x8xf32>, vector<8x8xf32> -> vector<8x8xf32>
    %c1_201 = arith.constant 1 : index
    %c0_202 = arith.constant 0 : index
    %c0_203 = arith.constant 0 : index
    %279 = vector.load %arg8[%c1_201, %c0_202, %c0_203] : memref<4x1x8xf32, #tpu.memory_space<vmem>>, vector<1x1x8xf32>
    %280 = vector.shape_cast %279 : vector<1x1x8xf32> to vector<1x8xf32>
    %281 = vector.broadcast %280 : vector<1x8xf32> to vector<8x8xf32>
    %282 = arith.addf %278, %281 : vector<8x8xf32>
    %cst_204 = arith.constant dense<0.000000e+00> : vector<8x8xf32>
    %283 = tpu.matmul %268, %275, %cst_204 {dimension_numbers = #tpu.dot_dimension_numbers<[1], [1], [0], [0], [0, 0, 1, 0], [], []>} : vector<8x8xf32>, vector<8x8xf32>, vector<8x8xf32> -> vector<8x8xf32>
    %cst_205 = arith.constant dense<0xFF800000> : vector<8xf32>
    %284 = vector.multi_reduction <maximumf>, %283, %cst_205 [1] : vector<8x8xf32> to vector<8xf32>
    %285 = vector.shape_cast %284 : vector<8xf32> to vector<8x1xf32>
    %286 = vector.broadcast %285 : vector<8x1xf32> to vector<8x8xf32>
    %287 = arith.subf %283, %286 : vector<8x8xf32>
    %288 = math.exp %287 : vector<8x8xf32>
    %cst_206 = arith.constant dense<0.000000e+00> : vector<8xf32>
    %289 = vector.multi_reduction <add>, %288, %cst_206 [1] : vector<8x8xf32> to vector<8xf32>
    %290 = vector.shape_cast %289 : vector<8xf32> to vector<8x1xf32>
    %291 = tpu.reciprocal %290 : vector<8x1xf32> -> vector<8x1xf32>
    %292 = vector.broadcast %291 : vector<8x1xf32> to vector<8x8xf32>
    %293 = arith.mulf %288, %292 : vector<8x8xf32>
    %cst_207 = arith.constant dense<0.000000e+00> : vector<8x8xf32>
    %294 = tpu.matmul %293, %282, %cst_207 {dimension_numbers = #tpu.dot_dimension_numbers<[1], [0], [0], [1], [0, 0, 1, 1], [], []>} : vector<8x8xf32>, vector<8x8xf32>, vector<8x8xf32> -> vector<8x8xf32>
    %c1_208 = arith.constant 1 : index
    %c0_209 = arith.constant 0 : index
    %c0_210 = arith.constant 0 : index
    %295 = vector.load %arg9[%c1_208, %c0_209, %c0_210] : memref<4x8x32xf32, #tpu.memory_space<vmem>>, vector<1x8x32xf32>
    %296 = vector.shape_cast %295 : vector<1x8x32xf32> to vector<8x32xf32>
    %cst_211 = arith.constant dense<0.000000e+00> : vector<8x32xf32>
    %297 = tpu.matmul %294, %296, %cst_211 {dimension_numbers = #tpu.dot_dimension_numbers<[1], [0], [0], [1], [0, 0, 1, 1], [], []>} : vector<8x8xf32>, vector<8x32xf32>, vector<8x32xf32> -> vector<8x32xf32>
    %298 = arith.addf %261, %297 : vector<8x32xf32>
    %c2_212 = arith.constant 2 : index
    %c0_213 = arith.constant 0 : index
    %c0_214 = arith.constant 0 : index
    %299 = vector.load %arg3[%c2_212, %c0_213, %c0_214] : memref<4x32x8xf32, #tpu.memory_space<vmem>>, vector<1x32x8xf32>
    %300 = vector.shape_cast %299 : vector<1x32x8xf32> to vector<32x8xf32>
    %cst_215 = arith.constant dense<0.000000e+00> : vector<8x8xf32>
    %301 = tpu.matmul %218, %300, %cst_215 {dimension_numbers = #tpu.dot_dimension_numbers<[1], [0], [0], [1], [0, 0, 1, 1], [], []>} : vector<8x32xf32>, vector<32x8xf32>, vector<8x8xf32> -> vector<8x8xf32>
    %c2_216 = arith.constant 2 : index
    %c0_217 = arith.constant 0 : index
    %c0_218 = arith.constant 0 : index
    %302 = vector.load %arg4[%c2_216, %c0_217, %c0_218] : memref<4x1x8xf32, #tpu.memory_space<vmem>>, vector<1x1x8xf32>
    %303 = vector.shape_cast %302 : vector<1x1x8xf32> to vector<1x8xf32>
    %304 = vector.broadcast %303 : vector<1x8xf32> to vector<8x8xf32>
    %305 = arith.addf %301, %304 : vector<8x8xf32>
    %c2_219 = arith.constant 2 : index
    %c0_220 = arith.constant 0 : index
    %c0_221 = arith.constant 0 : index
    %306 = vector.load %arg5[%c2_219, %c0_220, %c0_221] : memref<4x32x8xf32, #tpu.memory_space<vmem>>, vector<1x32x8xf32>
    %307 = vector.shape_cast %306 : vector<1x32x8xf32> to vector<32x8xf32>
    %cst_222 = arith.constant dense<0.000000e+00> : vector<8x8xf32>
    %308 = tpu.matmul %218, %307, %cst_222 {dimension_numbers = #tpu.dot_dimension_numbers<[1], [0], [0], [1], [0, 0, 1, 1], [], []>} : vector<8x32xf32>, vector<32x8xf32>, vector<8x8xf32> -> vector<8x8xf32>
    %c2_223 = arith.constant 2 : index
    %c0_224 = arith.constant 0 : index
    %c0_225 = arith.constant 0 : index
    %309 = vector.load %arg6[%c2_223, %c0_224, %c0_225] : memref<4x1x8xf32, #tpu.memory_space<vmem>>, vector<1x1x8xf32>
    %310 = vector.shape_cast %309 : vector<1x1x8xf32> to vector<1x8xf32>
    %311 = vector.broadcast %310 : vector<1x8xf32> to vector<8x8xf32>
    %312 = arith.addf %308, %311 : vector<8x8xf32>
    %c2_226 = arith.constant 2 : index
    %c0_227 = arith.constant 0 : index
    %c0_228 = arith.constant 0 : index
    %313 = vector.load %arg7[%c2_226, %c0_227, %c0_228] : memref<4x32x8xf32, #tpu.memory_space<vmem>>, vector<1x32x8xf32>
    %314 = vector.shape_cast %313 : vector<1x32x8xf32> to vector<32x8xf32>
    %cst_229 = arith.constant dense<0.000000e+00> : vector<8x8xf32>
    %315 = tpu.matmul %218, %314, %cst_229 {dimension_numbers = #tpu.dot_dimension_numbers<[1], [0], [0], [1], [0, 0, 1, 1], [], []>} : vector<8x32xf32>, vector<32x8xf32>, vector<8x8xf32> -> vector<8x8xf32>
    %c2_230 = arith.constant 2 : index
    %c0_231 = arith.constant 0 : index
    %c0_232 = arith.constant 0 : index
    %316 = vector.load %arg8[%c2_230, %c0_231, %c0_232] : memref<4x1x8xf32, #tpu.memory_space<vmem>>, vector<1x1x8xf32>
    %317 = vector.shape_cast %316 : vector<1x1x8xf32> to vector<1x8xf32>
    %318 = vector.broadcast %317 : vector<1x8xf32> to vector<8x8xf32>
    %319 = arith.addf %315, %318 : vector<8x8xf32>
    %cst_233 = arith.constant dense<0.000000e+00> : vector<8x8xf32>
    %320 = tpu.matmul %305, %312, %cst_233 {dimension_numbers = #tpu.dot_dimension_numbers<[1], [1], [0], [0], [0, 0, 1, 0], [], []>} : vector<8x8xf32>, vector<8x8xf32>, vector<8x8xf32> -> vector<8x8xf32>
    %cst_234 = arith.constant dense<0xFF800000> : vector<8xf32>
    %321 = vector.multi_reduction <maximumf>, %320, %cst_234 [1] : vector<8x8xf32> to vector<8xf32>
    %322 = vector.shape_cast %321 : vector<8xf32> to vector<8x1xf32>
    %323 = vector.broadcast %322 : vector<8x1xf32> to vector<8x8xf32>
    %324 = arith.subf %320, %323 : vector<8x8xf32>
    %325 = math.exp %324 : vector<8x8xf32>
    %cst_235 = arith.constant dense<0.000000e+00> : vector<8xf32>
    %326 = vector.multi_reduction <add>, %325, %cst_235 [1] : vector<8x8xf32> to vector<8xf32>
    %327 = vector.shape_cast %326 : vector<8xf32> to vector<8x1xf32>
    %328 = tpu.reciprocal %327 : vector<8x1xf32> -> vector<8x1xf32>
    %329 = vector.broadcast %328 : vector<8x1xf32> to vector<8x8xf32>
    %330 = arith.mulf %325, %329 : vector<8x8xf32>
    %cst_236 = arith.constant dense<0.000000e+00> : vector<8x8xf32>
    %331 = tpu.matmul %330, %319, %cst_236 {dimension_numbers = #tpu.dot_dimension_numbers<[1], [0], [0], [1], [0, 0, 1, 1], [], []>} : vector<8x8xf32>, vector<8x8xf32>, vector<8x8xf32> -> vector<8x8xf32>
    %c2_237 = arith.constant 2 : index
    %c0_238 = arith.constant 0 : index
    %c0_239 = arith.constant 0 : index
    %332 = vector.load %arg9[%c2_237, %c0_238, %c0_239] : memref<4x8x32xf32, #tpu.memory_space<vmem>>, vector<1x8x32xf32>
    %333 = vector.shape_cast %332 : vector<1x8x32xf32> to vector<8x32xf32>
    %cst_240 = arith.constant dense<0.000000e+00> : vector<8x32xf32>
    %334 = tpu.matmul %331, %333, %cst_240 {dimension_numbers = #tpu.dot_dimension_numbers<[1], [0], [0], [1], [0, 0, 1, 1], [], []>} : vector<8x8xf32>, vector<8x32xf32>, vector<8x32xf32> -> vector<8x32xf32>
    %335 = arith.addf %298, %334 : vector<8x32xf32>
    %c3_241 = arith.constant 3 : index
    %c0_242 = arith.constant 0 : index
    %c0_243 = arith.constant 0 : index
    %336 = vector.load %arg3[%c3_241, %c0_242, %c0_243] : memref<4x32x8xf32, #tpu.memory_space<vmem>>, vector<1x32x8xf32>
    %337 = vector.shape_cast %336 : vector<1x32x8xf32> to vector<32x8xf32>
    %cst_244 = arith.constant dense<0.000000e+00> : vector<8x8xf32>
    %338 = tpu.matmul %218, %337, %cst_244 {dimension_numbers = #tpu.dot_dimension_numbers<[1], [0], [0], [1], [0, 0, 1, 1], [], []>} : vector<8x32xf32>, vector<32x8xf32>, vector<8x8xf32> -> vector<8x8xf32>
    %c3_245 = arith.constant 3 : index
    %c0_246 = arith.constant 0 : index
    %c0_247 = arith.constant 0 : index
    %339 = vector.load %arg4[%c3_245, %c0_246, %c0_247] : memref<4x1x8xf32, #tpu.memory_space<vmem>>, vector<1x1x8xf32>
    %340 = vector.shape_cast %339 : vector<1x1x8xf32> to vector<1x8xf32>
    %341 = vector.broadcast %340 : vector<1x8xf32> to vector<8x8xf32>
    %342 = arith.addf %338, %341 : vector<8x8xf32>
    %c3_248 = arith.constant 3 : index
    %c0_249 = arith.constant 0 : index
    %c0_250 = arith.constant 0 : index
    %343 = vector.load %arg5[%c3_248, %c0_249, %c0_250] : memref<4x32x8xf32, #tpu.memory_space<vmem>>, vector<1x32x8xf32>
    %344 = vector.shape_cast %343 : vector<1x32x8xf32> to vector<32x8xf32>
    %cst_251 = arith.constant dense<0.000000e+00> : vector<8x8xf32>
    %345 = tpu.matmul %218, %344, %cst_251 {dimension_numbers = #tpu.dot_dimension_numbers<[1], [0], [0], [1], [0, 0, 1, 1], [], []>} : vector<8x32xf32>, vector<32x8xf32>, vector<8x8xf32> -> vector<8x8xf32>
    %c3_252 = arith.constant 3 : index
    %c0_253 = arith.constant 0 : index
    %c0_254 = arith.constant 0 : index
    %346 = vector.load %arg6[%c3_252, %c0_253, %c0_254] : memref<4x1x8xf32, #tpu.memory_space<vmem>>, vector<1x1x8xf32>
    %347 = vector.shape_cast %346 : vector<1x1x8xf32> to vector<1x8xf32>
    %348 = vector.broadcast %347 : vector<1x8xf32> to vector<8x8xf32>
    %349 = arith.addf %345, %348 : vector<8x8xf32>
    %c3_255 = arith.constant 3 : index
    %c0_256 = arith.constant 0 : index
    %c0_257 = arith.constant 0 : index
    %350 = vector.load %arg7[%c3_255, %c0_256, %c0_257] : memref<4x32x8xf32, #tpu.memory_space<vmem>>, vector<1x32x8xf32>
    %351 = vector.shape_cast %350 : vector<1x32x8xf32> to vector<32x8xf32>
    %cst_258 = arith.constant dense<0.000000e+00> : vector<8x8xf32>
    %352 = tpu.matmul %218, %351, %cst_258 {dimension_numbers = #tpu.dot_dimension_numbers<[1], [0], [0], [1], [0, 0, 1, 1], [], []>} : vector<8x32xf32>, vector<32x8xf32>, vector<8x8xf32> -> vector<8x8xf32>
    %c3_259 = arith.constant 3 : index
    %c0_260 = arith.constant 0 : index
    %c0_261 = arith.constant 0 : index
    %353 = vector.load %arg8[%c3_259, %c0_260, %c0_261] : memref<4x1x8xf32, #tpu.memory_space<vmem>>, vector<1x1x8xf32>
    %354 = vector.shape_cast %353 : vector<1x1x8xf32> to vector<1x8xf32>
    %355 = vector.broadcast %354 : vector<1x8xf32> to vector<8x8xf32>
    %356 = arith.addf %352, %355 : vector<8x8xf32>
    %cst_262 = arith.constant dense<0.000000e+00> : vector<8x8xf32>
    %357 = tpu.matmul %342, %349, %cst_262 {dimension_numbers = #tpu.dot_dimension_numbers<[1], [1], [0], [0], [0, 0, 1, 0], [], []>} : vector<8x8xf32>, vector<8x8xf32>, vector<8x8xf32> -> vector<8x8xf32>
    %cst_263 = arith.constant dense<0xFF800000> : vector<8xf32>
    %358 = vector.multi_reduction <maximumf>, %357, %cst_263 [1] : vector<8x8xf32> to vector<8xf32>
    %359 = vector.shape_cast %358 : vector<8xf32> to vector<8x1xf32>
    %360 = vector.broadcast %359 : vector<8x1xf32> to vector<8x8xf32>
    %361 = arith.subf %357, %360 : vector<8x8xf32>
    %362 = math.exp %361 : vector<8x8xf32>
    %cst_264 = arith.constant dense<0.000000e+00> : vector<8xf32>
    %363 = vector.multi_reduction <add>, %362, %cst_264 [1] : vector<8x8xf32> to vector<8xf32>
    %364 = vector.shape_cast %363 : vector<8xf32> to vector<8x1xf32>
    %365 = tpu.reciprocal %364 : vector<8x1xf32> -> vector<8x1xf32>
    %366 = vector.broadcast %365 : vector<8x1xf32> to vector<8x8xf32>
    %367 = arith.mulf %362, %366 : vector<8x8xf32>
    %cst_265 = arith.constant dense<0.000000e+00> : vector<8x8xf32>
    %368 = tpu.matmul %367, %356, %cst_265 {dimension_numbers = #tpu.dot_dimension_numbers<[1], [0], [0], [1], [0, 0, 1, 1], [], []>} : vector<8x8xf32>, vector<8x8xf32>, vector<8x8xf32> -> vector<8x8xf32>
    %c3_266 = arith.constant 3 : index
    %c0_267 = arith.constant 0 : index
    %c0_268 = arith.constant 0 : index
    %369 = vector.load %arg9[%c3_266, %c0_267, %c0_268] : memref<4x8x32xf32, #tpu.memory_space<vmem>>, vector<1x8x32xf32>
    %370 = vector.shape_cast %369 : vector<1x8x32xf32> to vector<8x32xf32>
    %cst_269 = arith.constant dense<0.000000e+00> : vector<8x32xf32>
    %371 = tpu.matmul %368, %370, %cst_269 {dimension_numbers = #tpu.dot_dimension_numbers<[1], [0], [0], [1], [0, 0, 1, 1], [], []>} : vector<8x8xf32>, vector<8x32xf32>, vector<8x32xf32> -> vector<8x32xf32>
    %372 = arith.addf %335, %371 : vector<8x32xf32>
    %c0_270 = arith.constant 0 : index
    %c0_271 = arith.constant 0 : index
    %373 = vector.load %arg10[%c0_270, %c0_271] : memref<1x32xf32, #tpu.memory_space<vmem>>, vector<1x32xf32>
    %374 = vector.broadcast %373 : vector<1x32xf32> to vector<8x32xf32>
    %375 = arith.addf %372, %374 : vector<8x32xf32>
    %376 = arith.addf %218, %375 : vector<8x32xf32>
    %c0_272 = arith.constant 0 : index
    %c0_273 = arith.constant 0 : index
    %377 = vector.load %arg11[%c0_272, %c0_273] : memref<1x32xf32, #tpu.memory_space<vmem>>, vector<1x32xf32>
    %c0_274 = arith.constant 0 : index
    %c0_275 = arith.constant 0 : index
    %378 = vector.load %arg12[%c0_274, %c0_275] : memref<1x32xf32, #tpu.memory_space<vmem>>, vector<1x32xf32>
    %cst_276 = arith.constant dense<0.000000e+00> : vector<8xf32>
    %379 = vector.multi_reduction <add>, %376, %cst_276 [1] : vector<8x32xf32> to vector<8xf32>
    %380 = vector.shape_cast %379 : vector<8xf32> to vector<8x1xf32>
    %cst_277 = arith.constant 3.200000e+01 : f32
    %381 = vector.broadcast %cst_277 : f32 to vector<8x1xf32>
    %382 = arith.divf %380, %381 : vector<8x1xf32>
    %383 = vector.broadcast %382 : vector<8x1xf32> to vector<8x32xf32>
    %384 = arith.subf %376, %383 : vector<8x32xf32>
    %385 = arith.mulf %384, %384 : vector<8x32xf32>
    %cst_278 = arith.constant dense<0.000000e+00> : vector<8xf32>
    %386 = vector.multi_reduction <add>, %385, %cst_278 [1] : vector<8x32xf32> to vector<8xf32>
    %387 = vector.shape_cast %386 : vector<8xf32> to vector<8x1xf32>
    %cst_279 = arith.constant 3.200000e+01 : f32
    %388 = vector.broadcast %cst_279 : f32 to vector<8x1xf32>
    %389 = arith.divf %387, %388 : vector<8x1xf32>
    %cst_280 = arith.constant 9.99999974E-6 : f32
    %390 = vector.broadcast %cst_280 : f32 to vector<8x1xf32>
    %391 = arith.addf %389, %390 : vector<8x1xf32>
    %392 = math.rsqrt %391 : vector<8x1xf32>
    %393 = vector.broadcast %392 : vector<8x1xf32> to vector<8x32xf32>
    %394 = arith.mulf %384, %393 : vector<8x32xf32>
    %395 = vector.broadcast %377 : vector<1x32xf32> to vector<8x32xf32>
    %396 = arith.mulf %394, %395 : vector<8x32xf32>
    %397 = vector.broadcast %378 : vector<1x32xf32> to vector<8x32xf32>
    %398 = arith.addf %396, %397 : vector<8x32xf32>
    %c0_281 = arith.constant 0 : index
    %c0_282 = arith.constant 0 : index
    %399 = vector.load %arg13[%c0_281, %c0_282] : memref<32x64xf32, #tpu.memory_space<vmem>>, vector<32x64xf32>
    %cst_283 = arith.constant dense<0.000000e+00> : vector<8x64xf32>
    %400 = tpu.matmul %398, %399, %cst_283 {dimension_numbers = #tpu.dot_dimension_numbers<[1], [0], [0], [1], [0, 0, 1, 1], [], []>} : vector<8x32xf32>, vector<32x64xf32>, vector<8x64xf32> -> vector<8x64xf32>
    %c0_284 = arith.constant 0 : index
    %c0_285 = arith.constant 0 : index
    %401 = vector.load %arg14[%c0_284, %c0_285] : memref<1x64xf32, #tpu.memory_space<vmem>>, vector<1x64xf32>
    %402 = vector.broadcast %401 : vector<1x64xf32> to vector<8x64xf32>
    %403 = arith.addf %400, %402 : vector<8x64xf32>
    %cst_286 = arith.constant 0.000000e+00 : f32
    %404 = vector.broadcast %cst_286 : f32 to vector<8x64xf32>
    %405 = arith.maximumf %403, %404 : vector<8x64xf32>
    %c0_287 = arith.constant 0 : index
    %c0_288 = arith.constant 0 : index
    %406 = vector.load %arg15[%c0_287, %c0_288] : memref<64x32xf32, #tpu.memory_space<vmem>>, vector<64x32xf32>
    %cst_289 = arith.constant dense<0.000000e+00> : vector<8x32xf32>
    %407 = tpu.matmul %405, %406, %cst_289 {dimension_numbers = #tpu.dot_dimension_numbers<[1], [0], [0], [1], [0, 0, 1, 1], [], []>} : vector<8x64xf32>, vector<64x32xf32>, vector<8x32xf32> -> vector<8x32xf32>
    %c0_290 = arith.constant 0 : index
    %c0_291 = arith.constant 0 : index
    %408 = vector.load %arg16[%c0_290, %c0_291] : memref<1x32xf32, #tpu.memory_space<vmem>>, vector<1x32xf32>
    %409 = vector.broadcast %408 : vector<1x32xf32> to vector<8x32xf32>
    %410 = arith.addf %407, %409 : vector<8x32xf32>
    %411 = arith.addf %398, %410 : vector<8x32xf32>
    %c0_292 = arith.constant 0 : index
    %c0_293 = arith.constant 0 : index
    %412 = vector.load %arg17[%c0_292, %c0_293] : memref<1x32xf32, #tpu.memory_space<vmem>>, vector<1x32xf32>
    %c0_294 = arith.constant 0 : index
    %c0_295 = arith.constant 0 : index
    %413 = vector.load %arg18[%c0_294, %c0_295] : memref<1x32xf32, #tpu.memory_space<vmem>>, vector<1x32xf32>
    %cst_296 = arith.constant dense<0.000000e+00> : vector<8xf32>
    %414 = vector.multi_reduction <add>, %411, %cst_296 [1] : vector<8x32xf32> to vector<8xf32>
    %415 = vector.shape_cast %414 : vector<8xf32> to vector<8x1xf32>
    %cst_297 = arith.constant 3.200000e+01 : f32
    %416 = vector.broadcast %cst_297 : f32 to vector<8x1xf32>
    %417 = arith.divf %415, %416 : vector<8x1xf32>
    %418 = vector.broadcast %417 : vector<8x1xf32> to vector<8x32xf32>
    %419 = arith.subf %411, %418 : vector<8x32xf32>
    %420 = arith.mulf %419, %419 : vector<8x32xf32>
    %cst_298 = arith.constant dense<0.000000e+00> : vector<8xf32>
    %421 = vector.multi_reduction <add>, %420, %cst_298 [1] : vector<8x32xf32> to vector<8xf32>
    %422 = vector.shape_cast %421 : vector<8xf32> to vector<8x1xf32>
    %cst_299 = arith.constant 3.200000e+01 : f32
    %423 = vector.broadcast %cst_299 : f32 to vector<8x1xf32>
    %424 = arith.divf %422, %423 : vector<8x1xf32>
    %cst_300 = arith.constant 9.99999974E-6 : f32
    %425 = vector.broadcast %cst_300 : f32 to vector<8x1xf32>
    %426 = arith.addf %424, %425 : vector<8x1xf32>
    %427 = math.rsqrt %426 : vector<8x1xf32>
    %428 = vector.broadcast %427 : vector<8x1xf32> to vector<8x32xf32>
    %429 = arith.mulf %419, %428 : vector<8x32xf32>
    %430 = vector.broadcast %412 : vector<1x32xf32> to vector<8x32xf32>
    %431 = arith.mulf %429, %430 : vector<8x32xf32>
    %432 = vector.broadcast %413 : vector<1x32xf32> to vector<8x32xf32>
    %433 = arith.addf %431, %432 : vector<8x32xf32>
    %c0_301 = arith.constant 0 : index
    %c0_302 = arith.constant 0 : index
    %c0_303 = arith.constant 0 : index
    %434 = vector.load %arg19[%c0_301, %c0_302, %c0_303] : memref<1x8x32xf32, #tpu.memory_space<vmem>>, vector<1x8x32xf32>
    %435 = vector.shape_cast %434 : vector<1x8x32xf32> to vector<8x32xf32>
    %436 = vector.shape_cast %433 : vector<8x32xf32> to vector<1x8x32xf32>
    tpu.vector_store %arg19[%c0_301, %c0_302, %c0_303], %436 {strides = array<i32>} : memref<1x8x32xf32, #tpu.memory_space<vmem>>, vector<1x8x32xf32>,
    return
  }
  func.func @transform_0(%arg0: i32) -> (i32, i32) {
    %c0_i32 = arith.constant 0 : i32
    %c0_i32_0 = arith.constant 0 : i32
    %c0_i32_1 = arith.constant 0 : i32
    return %c0_i32, %c0_i32_0 : i32, i32
  }
  func.func @transform_1(%arg0: i32) -> (i32, i32, i32) {
    %c0_i32 = arith.constant 0 : i32
    %c0_i32_0 = arith.constant 0 : i32
    %c0_i32_1 = arith.constant 0 : i32
    return %arg0, %c0_i32, %c0_i32_0 : i32, i32, i32
  }
  func.func @transform_2(%arg0: i32) -> (i32, i32, i32) {
    %c0_i32 = arith.constant 0 : i32
    %c0_i32_0 = arith.constant 0 : i32
    %c0_i32_1 = arith.constant 0 : i32
    %c0_i32_2 = arith.constant 0 : i32
    return %c0_i32, %c0_i32_0, %c0_i32_1 : i32, i32, i32
  }
  func.func @transform_3(%arg0: i32) -> (i32, i32, i32) {
    %c0_i32 = arith.constant 0 : i32
    %c0_i32_0 = arith.constant 0 : i32
    %c0_i32_1 = arith.constant 0 : i32
    %c0_i32_2 = arith.constant 0 : i32
    return %c0_i32, %c0_i32_0, %c0_i32_1 : i32, i32, i32
  }
  func.func @transform_4(%arg0: i32) -> (i32, i32, i32) {
    %c0_i32 = arith.constant 0 : i32
    %c0_i32_0 = arith.constant 0 : i32
    %c0_i32_1 = arith.constant 0 : i32
    %c0_i32_2 = arith.constant 0 : i32
    return %c0_i32, %c0_i32_0, %c0_i32_1 : i32, i32, i32
  }
  func.func @transform_5(%arg0: i32) -> (i32, i32, i32) {
    %c0_i32 = arith.constant 0 : i32
    %c0_i32_0 = arith.constant 0 : i32
    %c0_i32_1 = arith.constant 0 : i32
    %c0_i32_2 = arith.constant 0 : i32
    return %c0_i32, %c0_i32_0, %c0_i32_1 : i32, i32, i32
  }
  func.func @transform_6(%arg0: i32) -> (i32, i32, i32) {
    %c0_i32 = arith.constant 0 : i32
    %c0_i32_0 = arith.constant 0 : i32
    %c0_i32_1 = arith.constant 0 : i32
    %c0_i32_2 = arith.constant 0 : i32
    return %c0_i32, %c0_i32_0, %c0_i32_1 : i32, i32, i32
  }
  func.func @transform_7(%arg0: i32) -> (i32, i32, i32) {
    %c0_i32 = arith.constant 0 : i32
    %c0_i32_0 = arith.constant 0 : i32
    %c0_i32_1 = arith.constant 0 : i32
    %c0_i32_2 = arith.constant 0 : i32
    return %c0_i32, %c0_i32_0, %c0_i32_1 : i32, i32, i32
  }
  func.func @transform_8(%arg0: i32) -> (i32, i32, i32) {
    %c0_i32 = arith.constant 0 : i32
    %c0_i32_0 = arith.constant 0 : i32
    %c0_i32_1 = arith.constant 0 : i32
    %c0_i32_2 = arith.constant 0 : i32
    return %c0_i32, %c0_i32_0, %c0_i32_1 : i32, i32, i32
  }
  func.func @transform_9(%arg0: i32) -> (i32, i32) {
    %c0_i32 = arith.constant 0 : i32
    %c0_i32_0 = arith.constant 0 : i32
    %c0_i32_1 = arith.constant 0 : i32
    return %c0_i32, %c0_i32_0 : i32, i32
  }
  func.func @transform_10(%arg0: i32) -> (i32, i32) {
    %c0_i32 = arith.constant 0 : i32
    %c0_i32_0 = arith.constant 0 : i32
    %c0_i32_1 = arith.constant 0 : i32
    return %c0_i32, %c0_i32_0 : i32, i32
  }
  func.func @transform_11(%arg0: i32) -> (i32, i32) {
    %c0_i32 = arith.constant 0 : i32
    %c0_i32_0 = arith.constant 0 : i32
    %c0_i32_1 = arith.constant 0 : i32
    return %c0_i32, %c0_i32_0 : i32, i32
  }
  func.func @transform_12(%arg0: i32) -> (i32, i32) {
    %c0_i32 = arith.constant 0 : i32
    %c0_i32_0 = arith.constant 0 : i32
    %c0_i32_1 = arith.constant 0 : i32
    return %c0_i32, %c0_i32_0 : i32, i32
  }
  func.func @transform_13(%arg0: i32) -> (i32, i32) {
    %c0_i32 = arith.constant 0 : i32
    %c0_i32_0 = arith.constant 0 : i32
    %c0_i32_1 = arith.constant 0 : i32
    return %c0_i32, %c0_i32_0 : i32, i32
  }
  func.func @transform_14(%arg0: i32) -> (i32, i32) {
    %c0_i32 = arith.constant 0 : i32
    %c0_i32_0 = arith.constant 0 : i32
    %c0_i32_1 = arith.constant 0 : i32
    return %c0_i32, %c0_i32_0 : i32, i32
  }
  func.func @transform_15(%arg0: i32) -> (i32, i32) {
    %c0_i32 = arith.constant 0 : i32
    %c0_i32_0 = arith.constant 0 : i32
    %c0_i32_1 = arith.constant 0 : i32
    return %c0_i32, %c0_i32_0 : i32, i32
  }
  func.func @transform_16(%arg0: i32) -> (i32, i32) {
    %c0_i32 = arith.constant 0 : i32
    %c0_i32_0 = arith.constant 0 : i32
    %c0_i32_1 = arith.constant 0 : i32
    return %c0_i32, %c0_i32_0 : i32, i32
  }
  func.func @transform_17(%arg0: i32) -> (i32, i32) {
    %c0_i32 = arith.constant 0 : i32
    %c0_i32_0 = arith.constant 0 : i32
    %c0_i32_1 = arith.constant 0 : i32
    return %c0_i32, %c0_i32_0 : i32, i32
  }
  func.func @transform_18(%arg0: i32) -> (i32, i32, i32) {
    %c0_i32 = arith.constant 0 : i32
    %c0_i32_0 = arith.constant 0 : i32
    %c0_i32_1 = arith.constant 0 : i32
    return %arg0, %c0_i32, %c0_i32_0 : i32, i32, i32
  }
  func.func @transform_19(%arg0: i32) -> (i32, i32, i32) {
    %c0_i32 = arith.constant 0 : i32
    %c0_i32_0 = arith.constant 0 : i32
    %c0_i32_1 = arith.constant 0 : i32
    return %arg0, %c0_i32, %c0_i32_0 : i32, i32, i32
  }
}

</mosaic_0001>

<bundles_post_ra>
// kernel: tpu_custom_call.1
= control target key start
LH: loop header
LB: loop body
LE: loop exit
PB: predicated region body
PF: predicated region fallthrough
CT: control target
= control target key end

     0   :  { %s7311_s0 = inlined_call_operand.vmem [shape: f32[8,32], index: 0, kind: input, shape index: {}]   ;;  %s7312_s1 = inlined_call_operand.vmem [shape: f32[2,8,32], index: 1, kind: input, shape index: {}]   ;;  %s7313_s2 = inlined_call_operand.vmem [shape: f32[4,32,8], index: 2, kind: input, shape index: {}]   ;;  %s7314_s3 = inlined_call_operand.vmem [shape: f32[4,1,8], index: 3, kind: input, shape index: {}]   ;;  %s7315_s4 = inlined_call_operand.vmem [shape: f32[4,32,8], index: 4, kind: input, shape index: {}]   ;;  %s7316_s5 = inlined_call_operand.vmem [shape: f32[4,1,8], index: 5, kind: input, shape index: {}]   ;;  %s7317_s6 = inlined_call_operand.vmem [shape: f32[4,32,8], index: 6, kind: input, shape index: {}]   ;;  %s7318_s7 = inlined_call_operand.vmem [shape: f32[4,1,8], index: 7, kind: input, shape index: {}]   ;;  %s7319_s8 = inlined_call_operand.vmem [shape: f32[4,8,32], index: 8, kind: input, shape index: {}]   ;;  %s7320_s9 = inlined_call_operand.vmem [shape: f32[1,32], index: 9, kind: input, shape index: {}]   ;;  %s7321_s10 = inlined_call_operand.vmem [shape: f32[1,32], index: 10, kind: input, shape index: {}]   ;;  %s7322_s11 = inlined_call_operand.vmem [shape: f32[1,32], index: 11, kind: input, shape index: {}]   ;;  %s7323_s12 = inlined_call_operand.vmem [shape: f32[32,64], index: 12, kind: input, shape index: {}]   ;;  %s7324_s13 = inlined_call_operand.vmem [shape: f32[1,64], index: 13, kind: input, shape index: {}]   ;;  %s7325_s14 = inlined_call_operand.vmem [shape: f32[64,32], index: 14, kind: input, shape index: {}]   ;;  %s7326_s15 = inlined_call_operand.vmem [shape: f32[1,32], index: 15, kind: input, shape index: {}]   ;;  %s7327_s16 = inlined_call_operand.vmem [shape: f32[1,32], index: 16, kind: input, shape index: {}]   ;;  %s7328_s17 = inlined_call_operand.vmem [shape: f32[1,32], index: 17, kind: input, shape index: {}]   ;;  %s7329_s18 = inlined_call_operand.hbm [shape: f32[2,8,32], index: 18, kind: output, shape index: {0}]   ;;  %s7330_s19 = inlined_call_operand.hbm [shape: f32[2,8,8], index: 19, kind: output, shape index: {1}]  }
   0x1   :  { %7343 = sst [smem:[#allocation14_spill]] %s7311_s0 }
   0x2   :  { %7344 = sst [smem:[#allocation15_spill]] %s7312_s1 }
   0x3   :  { %7345 = sst [smem:[#allocation16_spill]] %s7313_s2 }
   0x4   :  { %7346 = sst [smem:[#allocation17_spill]] %s7314_s3 }
   0x5   :  { %7347 = sst [smem:[#allocation18_spill]] %s7315_s4 }
   0x6   :  { %7348 = sst [smem:[#allocation19_spill]] %s7329_s18 }
   0x7   :  { %7349 = sst [smem:[#allocation20_spill]] %s7330_s19 }
   0x8   :  { %25 = vsyncpa [#allocation3], 0 }
   0x9   :  { %27 = vsyncpa [#allocation3 + $0x1], 0 }
   0xa   :  { %28 = vsyncpa [#allocation5], 0 }
   0xb   :  { %30 = vsyncpa [#allocation5 + $0x1], 0  ;;  %s6390_s0 = smov 0   ;;  %s6392_s30 = smov 0  }
   0xc   :  { %s6394_s20 = smov 0   ;;  %s6396_s21 = smov 0  }
   0xd LB: > { %7350 = sst [smem:[#allocation8_spill]] %s6271_s0  ;;  %s6411_s1 = sadd.s32 4294967295, %s6283_s21   ;;  %s6283_s21 = sphi %s6396_s21, %s7370_s21   ;;  %s6279_s20 = sphi %s6394_s20, %s7372_s20   ;;  %s6275_s30 = sphi %s6392_s30, %s7374_s30   ;;  %s6271_s0 = sphi %s6390_s0, %s7373_s0  }
   0xe   : > { %7351 = sst [smem:[#allocation9_spill]] %s6279_s20  ;;  %s5075_s22 = sadd.s32 4294967294, %s6283_s21  }
   0xf   : > { %7352 = sst [smem:[#allocation10_spill]] %s6283_s21  ;;  %s6415_s2 = sadd.s32 1, %s6283_s21  }
  0x10   : > { %7353 = sst [smem:[#allocation11_spill]] %s6415_s2  ;;  %s426_s23 = sadd.s32 1, %s6279_s20 }
  0x11   : > { %s423_s24 = ssub.s32 %s6283_s21, %s6415_s2  ;;  %p436_p0 = scmp.ne.s32.totalorder %s6279_s20, %s6275_s30 }
  0x12   : > { %p424_p1 = scmp.eq.s32.totalorder %s423_s24, 0  ;;  %p437_p2 = scmp.eq.s32.totalorder %s6411_s1, 1 }
  0x13   : > { %p442_p3 = scmp.ne.s32.totalorder %s6275_s30, %s6271_s0  ;;  %p443_p4 = scmp.eq.s32.totalorder %s5075_s22, 1 }
  0x14   : > { %s6426_s25 = scalar_select %p424_p1, %s6279_s20, %s426_s23  }
  0x15   : > { %p6428_p5 = por %p437_p2, %p436_p0  ;;  %p6432_p6 = por %p443_p4, %p442_p3 }
  0x16   : > { %7354 = sst [smem:[#allocation12_spill]] %s6426_s25  ;;  %p5078_p7 = scmp.ge.s32.totalorder %s6283_s21, 1 }
  0x17   : > { %s7356_s26 = scalar_select %p6432_p6, 1, 0 }
  0x18   : > { %p545_p8 = scmp.lt.s32.totalorder %s6283_s21, 3 }
  0x19   : > { %7357 = sst [smem:[#allocation13_spill]] %s7356_s26 }
  0x1a   : > { %p546_p9 = pnand %p5078_p7, %p545_p8 }
  0x1b   : > { %s7358_s4 = sld [smem:[#allocation18_spill]] (!%p546_p9)  ;;  %s7359_s25 = sld [smem:[#allocation16_spill]] (!%p546_p9)  ;;  %v6285_v3 = vmov (!%p546_p9), 0.0|0.0   ;;  %vm6286_vm0 = vmmov (!%p546_p9), 0   ;;  %v6287_v11 = vmov (!%p546_p9), 0.0   ;;  %v778_v15 = vld [vmem:[%s7317_s6] sm:$0xff] (!%p546_p9) }
  0x1c   : > { %549 = sbr.rel (%p546_p9) target bundleno = 9875 (0x2693), region = 92  ;;  %5928 = vmatprep.subr.bf16.mxu1 (!%p546_p9), %v6285_v3  ;;  %5922 = vmatprep.subr.bf16.mxu0 (!%p546_p9), %v6285_v3  ;;  %p605_p10 = scmp.lt.s32.totalorder (!%p546_p9), %s6411_s1, 1  ;;  %v779_v16 = vld [vmem:[%s7317_s6 + $0x8] sm:$0xff] (!%p546_p9)  ;;  %vm623_vm1 = vcmask (!%p546_p9), 261120   ;;  %v780_v20 = vld [vmem:[%s7317_s6 + $0x10] sm:$0xff] (!%p546_p9)  ;;  %v781_v21 = vld [vmem:[%s7317_s6 + $0x18] sm:$0xff] (!%p546_p9) }
  0x1d   : > { %5497 = vmatprep.mubr.msk.f32.mxu1 (!%p546_p9), %vm6286_vm0, %v6287_v11  ;;  %5486 = vmatprep.mubr.msk.f32.mxu0 (!%p546_p9), %vm6286_vm0, %v6287_v11  ;;  %s7360_s27 = sld [smem:[#allocation14_spill]] (!%p546_p9)  ;;  %s7361_s18 = sld [smem:[#allocation15_spill]] (!%p546_p9)  ;;  %v6498_v19 = vpack.c.bf16 (!%p546_p9), %v779_v16, %v778_v15  ;;  %v6515_v22 = vpack.c.bf16 (!%p546_p9), %v781_v21, %v780_v20  ;;  %v6529_v23 = vld [vmem:[%s7316_s5] ss:$0 sm:$0xff] (!%p546_p9)  ;;  %vm859_vm2 = vcmask (!%p546_p9), 64512   ;;  %vm2691_vm3 = vcmask (!%p546_p9), 523264  }
  0x1e   : > { %s7362_s28 = sld [smem:[#allocation17_spill]] (!%p546_p9)  ;;  %v6544_v31 = vld [vmem:[%s7318_s7] ss:$0 sm:$0xff] (!%p546_p9)  ;;  %v6609_v62 = vld [vmem:[%s7316_s5 + $0x1] ss:$0 sm:$0xff] (!%p546_p9)  ;;  %s7363_s29 = sld [smem:[#allocation20_spill]] (!%p546_p9) }
  0x21   : > { %v697_v0 = vld [vmem:[%s7358_s4] sm:$0xff] (!%p546_p9)  ;;  %v698_v1 = vld [vmem:[%s7358_s4 + $0x8] sm:$0xff] (!%p546_p9)  ;;  %v699_v6 = vld [vmem:[%s7358_s4 + $0x10] sm:$0xff] (!%p546_p9) }
  0x22   : > { %v612_v2 = vld [vmem:[%s7359_s25] sm:$0xff] (!%p546_p9)  ;;  %v6448_v4 = vpack.c.bf16 (!%p546_p9), %v698_v1, %v697_v0  ;;  %v613_v5 = vld [vmem:[%s7359_s25 + $0x8] sm:$0xff] (!%p546_p9)  ;;  %v700_v7 = vld [vmem:[%s7358_s4 + $0x18] sm:$0xff] (!%p546_p9) }
  0x23   : > { %v6461_v8 = vpack.c.bf16 %v613_v5, %v612_v2  ;;  %v614_v9 = vld [vmem:[%s7359_s25 + $0x10] sm:$0xff]  ;;  %v615_v10 = vld [vmem:[%s7359_s25 + $0x18] sm:$0xff]  ;;  %v6474_v12 = vpack.c.bf16 %v700_v7, %v699_v6  ;;  %s606_s20 = scalar_select %p605_p10, %s6411_s1, 1  ;;  %v610_v14 = vld [vmem:[%s7360_s27] sm:$0xff] }
  0x24   : > { %5930 = vmatpush3.bf16.msra.mxu1 %v6448_v4  ;;  %v6479_v13 = vpack.c.bf16 %v615_v10, %v614_v9  ;;  %v6534_v24 = vld [vmem:[%s7362_s28] ss:$0 sm:$0xff]  ;;  %v5092_v44 = vld [vmem:[%s7359_s25 + $0x28] sm:$0xff]  ;;  %v5093_v46 = vld [vmem:[%s7359_s25 + $0x30] sm:$0xff] }
  0x25   : > { %5924 = vmatpush3.bf16.msra.mxu0 %v6461_v8  ;;  %5931 = vmatprep.subr.bf16.mxu1 %v6285_v3  ;;  %s5081_s0 = sshll.u32 %s606_s20, 3  ;;  %v5091_v43 = vld [vmem:[%s7359_s25 + $0x20] sm:$0xff]  ;;  %v5094_v47 = vld [vmem:[%s7359_s25 + $0x38] sm:$0xff]  ;;  %v5099_v51 = vld [vmem:[%s7358_s4 + $0x28] sm:$0xff]  ;;  %s6906_s20 = sand.u32 1, %s6275_s30  }
  0x26   : > { %5925 = vmatprep.subr.bf16.mxu0 %v6285_v3  ;;  %s608_s19 = scalar_lea.vmem %s7361_s18, %s5081_s0  ;;  %v6558_v45 = vpack.c.bf16 %v5092_v44, %v5091_v43  ;;  %v6568_v48 = vpack.c.bf16 %v5094_v47, %v5093_v46  ;;  %v5098_v50 = vld [vmem:[%s7358_s4 + $0x20] sm:$0xff]  ;;  %v5100_v55 = vld [vmem:[%s7358_s4 + $0x30] sm:$0xff]  ;;  %v5101_v56 = vld [vmem:[%s7358_s4 + $0x38] sm:$0xff]  ;;  %s7341_s2 = sshll.u32 %s6906_s20, 3 }
  0x27   : > { %v609_v17 = vld [vmem:[%s608_s19] sm:$0xff]  ;;  %v6582_v53 = vpack.c.bf16 %v5099_v51, %v5098_v50  ;;  %v6595_v57 = vpack.c.bf16 %v5101_v56, %v5100_v55  ;;  %v5106_v7 = vld [vmem:[%s7317_s6 + $0x28] sm:$0xff]  ;;  %v5107_v9 = vld [vmem:[%s7317_s6 + $0x30] sm:$0xff]  ;;  %s6915_s21 = scalar_lea.vmem [#allocation4], %s7341_s2  ;;  %s7342_s0 = sshll.u32 %s6411_s1, 7 }
  0x28   : > { %5933 = vmatpush3.bf16.msra.mxu1 %v6474_v12  ;;  %v6496_v18 = vadd.f32 %v610_v14, %v609_v17  ;;  %v6614_v63 = vld [vmem:[%s7362_s28 + $0x1] ss:$0 sm:$0xff]  ;;  %v5108_v14 = vld [vmem:[%s7317_s6 + $0x38] sm:$0xff]  ;;  %v5119_v47 = vld [vmem:[%s7359_s25 + $0x48] sm:$0xff]  ;;  %s7237_s22 = scalar_lea.hbm %s7363_s29, %s7342_s0  ;;  %s4984_s23 = sshll.u32 %s6915_s21, 4  ;;  %s4985_s23 = int_to_ptr.vmem [resolvable:$true] %s4984_s23 }
  0x29   : > { %5927 = vmatpush3.bf16.msra.mxu0 %v6479_v13  ;;  %5516 = vmatprep.subr.mxu1 %v6287_v11  ;;  %v5105_v6 = vld [vmem:[%s7317_s6 + $0x20] sm:$0xff]  ;;  %v6638_v15 = vpack.c.bf16 %v5108_v14, %v5107_v9  ;;  %v5128_v43 = vld [vmem:[%s7358_s4 + $0x58] sm:$0xff]  ;;  %v5120_v50 = vld [vmem:[%s7359_s25 + $0x50] sm:$0xff]  ;;  %s4958_s24 = scalar_lea.sflag [#allocation5], %s6906_s20  ;;  %s6189_s18 = scalar_lea.vmem %s4985_s23, 128 }
  0x2a   : > { %5934 = vmatprep.subr.bf16.mxu0 %v6285_v3  ;;  %v6632_v10 = vpack.c.bf16 %v5106_v7, %v5105_v6  ;;  %v5118_v46 = vld [vmem:[%s7359_s25 + $0x40] sm:$0xff]  ;;  %v5121_v51 = vld [vmem:[%s7359_s25 + $0x58] sm:$0xff]  ;;  %p6190_p11 = scmp.ne.s32.totalorder %s4985_s23, %s6189_s18  ;;  %s6288_s19 = smov [#allocation4]  }
  0x2b   : > { %5498 = vmatmul.mubr.msk.f32.vlgmr.msra.gmra.mrb[0].mxu1 %vm623_vm1, %v6496_v18  ;;  %v6719_v56 = vpack.c.bf16 %v5121_v51, %v5120_v50  ;;  %v6743_v7 = vld [vmem:[%s7362_s28 + $0x2] ss:$0 sm:$0xff]  ;;  %v6784_v50 = vld [vmem:[%s7319_s8 + $0x10] sm:$0xff]  ;;  %s6193_s2 = sshll.u32 %s6288_s19, 4  ;;  %s6194_s2 = int_to_ptr.vmem [resolvable:$false] %s6193_s2 }
  0x2c   : > { %5487 = vmatmul.mubr.msk.f32.vlgmr.msra.gmra.mrb[0].mxu0 %vm623_vm1, %v6496_v18  ;;  %5518 = vmatprep.mubr.msk.f32.mxu1 %vm6286_vm0, %v6287_v11  ;;  %p6191_p12 = pnand %p6190_p11, %p6428_p5  ;;  %p6196_p0 = scmp.lt.s32.totalorder %s4985_s23, %s6194_s2 }
  0x2d   : > { %5936 = vmatpush3.bf16.msra.mxu0 %v6498_v19  ;;  %5508 = vmatprep.mubr.msk.f32.mxu0 %vm6286_vm0, %v6287_v11 }
  0x2e   : > { %5937 = vmatprep.subr.bf16.mxu0 %v6285_v3  ;;  %p6192_p13 = pneg %p6191_p12 }
  0x31   : > { %5939 = vmatpush3.bf16.msra.mxu0 %v6515_v22 }
  0x32   : > { %5511 = vmatprep.subr.mxu0 %v6287_v11 }
  0x34   : > { %5509 = vmatmul.mubr.msk.f32.vlgmr.msra.gmra.mrb[2].mxu0 %vm623_vm1, %v6496_v18 }
  0x35   : > { %5513 = vmatprep.mubr.msk.f32.mxu0 %vm6286_vm0, %v6287_v11 }
  0xfe   : > { %v774_v25 = vpop.f32.mrb[0].mxu1 }
  0xff   : > { %v775_v26 = vadd.f32 %v6529_v23, %v774_v25  ;;  %v5499_v27 = vpop.f32.mrb[1].mxu1  ;;  %v693_v28 = vpop.f32.mrb[0].mxu0 }
 0x100   : > { %v694_v29 = vadd.f32 %v6534_v24, %v693_v28  ;;  %v5488_v30 = vpop.f32.mrb[1].mxu0 }
 0x101   : > { %5512 = vmatpush3.xpose.msk.msra.mxu0 %vm859_vm2, %v775_v26  ;;  %v6652_v30 = vld [vmem:[%s7318_s7 + $0x1] ss:$0 sm:$0xff] }
 0x102   : > { %5940 = vmatprep.subr.bf16.mxu0 %v6285_v3 }
 0x104   : > { %5514 = vmatmul.mubr.msk.f32.vlgmr.msra.gmra.mrb[4].mxu0 %vm859_vm2, %v694_v29 }
 0x105   : > { %5529 = vmatprep.mubr.msk.f32.mxu0 %vm6286_vm0, %v6287_v11  ;;  %5942 = vmatpush3.bf16.msra.mxu0 %v6558_v45 }
 0x106   : > { %5943 = vmatprep.subr.bf16.mxu0 %v6285_v3 }
 0x107   : > { %v855_v32 = vpop.f32.mrb[2].mxu0 }
 0x108   : > { %v856_v33 = vadd.f32 %v6544_v31, %v855_v32  ;;  %v5510_v34 = vpop.f32.mrb[3].mxu0 }
 0x109   : > { %5945 = vmatpush3.bf16.msra.mxu0 %v6568_v48  ;;  %v6659_v34 = vld [vmem:[%s7319_s8 + $0x8] sm:$0xff] }
 0x10a   : > { %5517 = vmatpush3.msra.mxu1 %v856_v33  ;;  %5952 = vmatprep.subr.bf16.mxu0 %v6285_v3 }
 0x10b   : > { %5946 = vmatprep.subr.bf16.mxu1 %v6285_v3 }
 0x10c   : > { %5530 = vmatmul.mubr.msk.f32.vlgmr.msra.gmra.mrb[6].mxu0 %vm623_vm1, %v6496_v18 }
 0x10d   : > { %5551 = vmatprep.mubr.msk.f32.mxu0 %vm6286_vm0, %v6287_v11  ;;  %5954 = vmatpush3.bf16.msra.mxu0 %v6632_v10 }
 0x10e   : > { %5955 = vmatprep.subr.bf16.mxu0 %v6285_v3 }
 0x111   : > { %5957 = vmatpush3.bf16.msra.mxu0 %v6638_v15 }
 0x112   : > { %5564 = vmatprep.subr.mxu0 %v6287_v11 }
 0x114   : > { %5552 = vmatmul.mubr.msk.f32.vlgmr.msra.gmra.mrb[8].mxu0 %vm623_vm1, %v6496_v18 }
 0x115   : > { %5566 = vmatprep.mubr.msk.f32.mxu0 %vm6286_vm0, %v6287_v11  ;;  %5565 = vmatpush3.msra.mxu0 %v6659_v34 }
 0x116   : > { %5958 = vmatprep.subr.bf16.mxu0 %v6285_v3 }
 0x1d7   : > { %v932_v35 = vpop.f32.mrb[4].mxu0 }
 0x1d8   : > { %v5515_v36 = vpop.f32.mrb[5].mxu0  ;;  %v936_v37 = vsel %vm859_vm2, %v932_v35, -inf }
 0x1d9   : > { %937 = vmax.xlane.f32.xlu0 %v936_v37 }
 0x1df   : > { %v1101_v58 = vpop.f32.mrb[6].mxu0 }
 0x1e0   : > { %v5531_v59 = vpop.f32.mrb[7].mxu0  ;;  %v1102_v5 = vadd.f32 %v6614_v63, %v1101_v58 }
 0x1e7   : > { %v1267_v29 = vpop.f32.mrb[8].mxu0 }
 0x1e8   : > { %v5553_v32 = vpop.f32.mrb[9].mxu0  ;;  %v1268_v33 = vadd.f32 %v6652_v30, %v1267_v29 }
 0x266   : > { %v938_v38 = vpop.xlane.xlu0 %937 }
 0x267   : > { %v939_v39 = vsub.f32 %v932_v35, %v938_v38  ;;  %v6668_v38 = vld [vmem:[%s7319_s8] sm:$0xff] }
 0x269   : > { %v940_v40 = vmul.f32 1.442695, %v939_v39  ;;  %v5125_v39 = vld [vmem:[%s7358_s4 + $0x40] sm:$0xff] }
 0x26b   : > { %6149 = vpow2.f32 %v940_v40  ;;  %v5126_v40 = vld [vmem:[%s7358_s4 + $0x48] sm:$0xff] }
 0x275   : > { %v6150_v41 = vpop.eup %6149 }
 0x276   : > { %v942_v42 = vsel %vm859_vm2, %v6150_v41, 0.0 }
 0x277   : > { %943 = vadd.xlane.f32.xlu0 %v942_v42  ;;  %v5127_v42 = vld [vmem:[%s7358_s4 + $0x50] sm:$0xff] }
 0x278   : > { %v6695_v44 = vpack.c.bf16 %v5128_v43, %v5127_v42  ;;  %v6778_v43 = vld [vmem:[%s7318_s7 + $0x2] ss:$0 sm:$0xff] }
 0x304   : > { %v944_v49 = vpop.xlane.xlu0 %943 }
 0x305   : > { %6151 = vrcp.f32 %v944_v49  ;;  %v6709_v49 = vpack.c.bf16 %v5119_v47, %v5118_v46 }
 0x30f   : > { %v6152_v52 = vpop.eup %6151 }
 0x310   : > { %v6584_v54 = vmul.f32 %v6152_v52, %v6150_v41  ;;  %v6681_v41 = vpack.c.bf16 %v5126_v40, %v5125_v39 }
 0x312   : > { %5519 = vmatmul.mubr.msk.f32.vlgmr.msra.gmra.mrb[2].mxu1 %vm859_vm2, %v6584_v54 }
 0x313   : > { %5948 = vmatpush3.bf16.msra.mxu1 %v6582_v53  ;;  %5540 = vmatprep.mubr.msk.f32.mxu1 %vm6286_vm0, %v6287_v11 }
 0x314   : > { %5949 = vmatprep.subr.bf16.mxu1 %v6285_v3 }
 0x317   : > { %5951 = vmatpush3.bf16.msra.mxu1 %v6595_v57 }
 0x318   : > { %5554 = vmatprep.subr.mxu1 %v6287_v11 }
 0x31a   : > { %5541 = vmatmul.mubr.msk.f32.vlgmr.msra.gmra.mrb[4].mxu1 %vm623_vm1, %v6496_v18 }
 0x31b   : > { %5556 = vmatprep.mubr.msk.f32.mxu1 %vm6286_vm0, %v6287_v11 }
 0x3e5   : > { %v1017_v60 = vpop.f32.mrb[2].mxu1 }
 0x3e6   : > { %v5520_v61 = vpop.f32.mrb[3].mxu1 }
 0x3ed   : > { %v1184_v0 = vpop.f32.mrb[4].mxu1 }
 0x3ee   : > { %v1185_v1 = vadd.f32 %v6609_v62, %v1184_v0  ;;  %v5542_v2 = vpop.f32.mrb[5].mxu1 }
 0x3f0   : > { %5555 = vmatpush3.xpose.msk.msra.mxu1 %vm859_vm2, %v1185_v1 }
 0x3f1   : > { %5559 = vmatprep.subr.mxu1 %v6287_v11 }
 0x3f3   : > { %5557 = vmatmul.mubr.msk.f32.vlgmr.msra.gmra.mrb[6].mxu1 %vm859_vm2, %v1102_v5 }
 0x3f4   : > { %5561 = vmatprep.mubr.msk.f32.mxu1 %vm6286_vm0, %v6287_v11  ;;  %5560 = vmatpush3.msra.mxu1 %v1268_v33 }
 0x3f5   : > { %5569 = vmatprep.subr.mxu1 %v6287_v11 }
 0x4c6   : > { %v1343_v16 = vpop.f32.mrb[6].mxu1 }
 0x4c7   : > { %v5558_v17 = vpop.f32.mrb[7].mxu1  ;;  %v1347_v20 = vsel %vm859_vm2, %v1343_v16, -inf }
 0x4c8   : > { %1348 = vmax.xlane.f32.xlu1 %v1347_v20  ;;  %v5132_v17 = vld [vmem:[%s7317_s6 + $0x40] sm:$0xff]  ;;  %v5133_v20 = vld [vmem:[%s7317_s6 + $0x48] sm:$0xff] }
 0x555   : > { %v1349_v21 = vpop.xlane.xlu1 %1348 }
 0x556   : > { %v1350_v25 = vsub.f32 %v1343_v16, %v1349_v21  ;;  %v5134_v21 = vld [vmem:[%s7317_s6 + $0x50] sm:$0xff] }
 0x558   : > { %v1351_v26 = vmul.f32 1.442695, %v1350_v25  ;;  %v6758_v25 = vpack.c.bf16 %v5133_v20, %v5132_v17  ;;  %v5154_v17 = vld [vmem:[%s7358_s4 + $0x78] sm:$0xff] }
 0x55a   : > { %6153 = vpow2.f32 %v1351_v26  ;;  %v5135_v26 = vld [vmem:[%s7317_s6 + $0x58] sm:$0xff] }
 0x564   : > { %v6154_v27 = vpop.eup %6153 }
 0x565   : > { %v1353_v28 = vsel %vm859_vm2, %v6154_v27, 0.0 }
 0x566   : > { %1354 = vadd.xlane.f32.xlu1 %v1353_v28 }
 0x5f3   : > { %v1355_v35 = vpop.xlane.xlu1 %1354 }
 0x5f4   : > { %6155 = vrcp.f32 %v1355_v35 }
 0x5fe   : > { %v6156_v36 = vpop.eup %6155 }
 0x5ff   : > { %v6663_v37 = vmul.f32 %v6156_v36, %v6154_v27  ;;  %v6764_v27 = vpack.c.bf16 %v5135_v26, %v5134_v21 }
 0x601   : > { %5562 = vmatmul.mubr.msk.f32.vlgmr.msra.gmra.mrb[8].mxu1 %vm859_vm2, %v6663_v37 }
 0x602   : > { %5570 = vmatpush3.msra.mxu1 %v6668_v38  ;;  %5571 = vmatprep.mubr.msk.f32.mxu1 %vm6286_vm0, %v6287_v11 }
 0x603   : > { %5964 = vmatprep.subr.bf16.mxu1 %v6285_v3 }
 0x605   : > { %5572 = vmatmul.mubr.msk.f32.vlgmr.msra.gmra.mrb[10].mxu1 %vm859_vm2, %v1017_v60  ;;  %v6733_v60 = vld [vmem:[%s7316_s5 + $0x2] ss:$0 sm:$0xff] }
 0x606   : > { %5966 = vmatpush3.bf16.msra.mxu1 %v6681_v41  ;;  %5593 = vmatprep.mubr.msk.f32.mxu1 %vm6286_vm0, %v6287_v11 }
 0x607   : > { %5967 = vmatprep.subr.bf16.mxu1 %v6285_v3 }
 0x60a   : > { %5969 = vmatpush3.bf16.msra.mxu1 %v6695_v44 }
 0x60b   : > { %5607 = vmatprep.subr.mxu1 %v6287_v11 }
 0x60d   : > { %5594 = vmatmul.mubr.msk.f32.vlgmr.msra.gmra.mrb[12].mxu1 %vm623_vm1, %v6496_v18 }
 0x60e   : > { %5609 = vmatprep.mubr.msk.f32.mxu1 %vm6286_vm0, %v6287_v11 }
 0x6d4   : > { %v1428_v52 = vpop.f32.mrb[8].mxu1 }
 0x6d5   : > { %v5563_v55 = vpop.f32.mrb[9].mxu1  ;;  %5567 = vmatmul.mubr.msk.f32.vlgmr.msra.gmra.mrb[10].mxu0 %vm859_vm2, %v1428_v52 }
 0x6d6   : > { %5960 = vmatpush3.bf16.msra.mxu0 %v6709_v49  ;;  %5582 = vmatprep.mubr.msk.f32.mxu0 %vm6286_vm0, %v6287_v11 }
 0x6d7   : > { %5961 = vmatprep.subr.bf16.mxu0 %v6285_v3 }
 0x6d8   : > { %v1576_v58 = vpop.f32.mrb[10].mxu1 }
 0x6d9   : > { %v5573_v59 = vpop.f32.mrb[11].mxu1 }
 0x6da   : > { %5963 = vmatpush3.bf16.msra.mxu0 %v6719_v56 }
 0x6db   : > { %5970 = vmatprep.subr.bf16.mxu0 %v6285_v3 }
 0x6dd   : > { %5583 = vmatmul.mubr.msk.f32.vlgmr.msra.gmra.mrb[12].mxu0 %vm623_vm1, %v6496_v18 }
 0x6de   : > { %5604 = vmatprep.mubr.msk.f32.mxu0 %vm6286_vm0, %v6287_v11  ;;  %5972 = vmatpush3.bf16.msra.mxu0 %v6758_v25 }
 0x6df   : > { %5973 = vmatprep.subr.bf16.mxu0 %v6285_v3 }
 0x6e0   : > { %v1742_v61 = vpop.f32.mrb[12].mxu1 }
 0x6e1   : > { %v1743_v0 = vadd.f32 %v6733_v60, %v1742_v61  ;;  %v5595_v1 = vpop.f32.mrb[13].mxu1  ;;  %v5144_v61 = vld [vmem:[%s7359_s25 + $0x60] sm:$0xff] }
 0x6e2   : > { %5975 = vmatpush3.bf16.msra.mxu0 %v6764_v27 }
 0x6e3   : > { %5608 = vmatpush3.xpose.msk.msra.mxu1 %vm859_vm2, %v1743_v0  ;;  %5617 = vmatprep.subr.mxu0 %v6287_v11  ;;  %v5145_v0 = vld [vmem:[%s7359_s25 + $0x68] sm:$0xff] }
 0x6e4   : > { %5612 = vmatprep.subr.mxu1 %v6287_v11  ;;  %v6802_v1 = vpack.c.bf16 %v5145_v0, %v5144_v61 }
 0x6e5   : > { %5605 = vmatmul.mubr.msk.f32.vlgmr.msra.gmra.mrb[14].mxu0 %vm623_vm1, %v6496_v18 }
 0x6e6   : > { %5619 = vmatprep.mubr.msk.f32.mxu0 %vm6286_vm0, %v6287_v11  ;;  %5618 = vmatpush3.msra.mxu0 %v6784_v50 }
 0x6e7   : > { %5982 = vmatprep.subr.bf16.mxu0 %v6285_v3 }
 0x7a8   : > { %v1503_v2 = vpop.f32.mrb[10].mxu0 }
 0x7a9   : > { %v6738_v5 = vadd.f32 %v1576_v58, %v1503_v2  ;;  %v5568_v6 = vpop.f32.mrb[11].mxu0  ;;  %v1358_v58 = vadd.f32 %v6663_v37, %v6584_v54  ;;  %v5146_v54 = vld [vmem:[%s7359_s25 + $0x70] sm:$0xff]  ;;  %v5147_v37 = vld [vmem:[%s7359_s25 + $0x78] sm:$0xff] }
 0x7aa   : > { %v6812_v2 = vpack.c.bf16 %v5147_v37, %v5146_v54  ;;  %v5151_v6 = vld [vmem:[%s7358_s4 + $0x60] sm:$0xff] }
 0x7b0   : > { %v1659_v9 = vpop.f32.mrb[12].mxu0 }
 0x7b1   : > { %v1660_v14 = vadd.f32 %v6743_v7, %v1659_v9  ;;  %v5584_v16 = vpop.f32.mrb[13].mxu0  ;;  %v5152_v9 = vld [vmem:[%s7358_s4 + $0x68] sm:$0xff] }
 0x7b2   : > { %v5153_v16 = vld [vmem:[%s7358_s4 + $0x70] sm:$0xff]  ;;  %s6195_s4 = scalar_lea.vmem %s6194_s2, 256 }
 0x7b3   : > { %5610 = vmatmul.mubr.msk.f32.vlgmr.msra.gmra.mrb[14].mxu1 %vm859_vm2, %v1660_v14  ;;  %v6826_v14 = vpack.c.bf16 %v5152_v9, %v5151_v6  ;;  %v6836_v26 = vpack.c.bf16 %v5154_v17, %v5153_v16  ;;  %p6197_p1 = scmp.lt.s32.totalorder %s6195_s4, %s6189_s18 }
 0x7b4   : > { %5614 = vmatprep.mubr.msk.f32.mxu1 %vm6286_vm0, %v6287_v11 }
 0x7b5   : > { %p6198_p2 = por %p6197_p1, %p6196_p0 }
 0x7b7   : > { %p6199_p3 = pnand %p6198_p2, %p6192_p13 }
 0x7b8   : > { %v1825_v42 = vpop.f32.mrb[14].mxu0 }
 0x7b9   : > { %v5606_v46 = vpop.f32.mrb[15].mxu0  ;;  %v1826_v47 = vadd.f32 %v6778_v43, %v1825_v42 }
 0x7bb   : > { %5613 = vmatpush3.msra.mxu1 %v1826_v47 }
 0x7bc   : > { %5976 = vmatprep.subr.bf16.mxu1 %v6285_v3 }
 0x886   : > { %v1901_v28 = vpop.f32.mrb[14].mxu1 }
 0x887   : > { %v5611_v29 = vpop.f32.mrb[15].mxu1  ;;  %v1905_v32 = vsel %vm859_vm2, %v1901_v28, -inf }
 0x888   : > { %1906 = vmax.xlane.f32.xlu0 %v1905_v32 }
 0x915   : > { %v1907_v33 = vpop.xlane.xlu0 %1906 }
 0x916   : > { %v1908_v35 = vsub.f32 %v1901_v28, %v1907_v33 }
 0x918   : > { %v1909_v36 = vmul.f32 1.442695, %v1908_v35 }
 0x91a   : > { %6157 = vpow2.f32 %v1909_v36  ;;  %v6851_v36 = vld [vmem:[%s7316_s5 + $0x3] ss:$0 sm:$0xff] }
 0x924   : > { %v6158_v39 = vpop.eup %6157 }
 0x925   : > { %v1911_v40 = vsel %vm859_vm2, %v6158_v39, 0.0 }
 0x926   : > { %1912 = vadd.xlane.f32.xlu1 %v1911_v40 }
 0x9b3   : > { %v1913_v51 = vpop.xlane.xlu1 %1912 }
 0x9b4   : > { %6159 = vrcp.f32 %v1913_v51  ;;  %v5159_v51 = vld [vmem:[%s7317_s6 + $0x68] sm:$0xff] }
 0x9be   : > { %v6160_v52 = vpop.eup %6159 }
 0x9bf   : > { %v1915_v55 = vmul.f32 %v6160_v52, %v6158_v39  ;;  %v6856_v39 = vld [vmem:[%s7362_s28 + $0x3] ss:$0 sm:$0xff]  ;;  %v5160_v52 = vld [vmem:[%s7317_s6 + $0x70] sm:$0xff] }
 0x9c1   : > { %5615 = vmatmul.mubr.msk.f32.vlgmr.msra.gmra.mrb[16].mxu1 %vm859_vm2, %v1915_v55  ;;  %v6792_v59 = vadd.f32 %v1915_v55, %v1358_v58  ;;  %v5161_v58 = vld [vmem:[%s7317_s6 + $0x78] sm:$0xff] }
 0x9c2   : > { %5630 = vmatprep.mubr.msk.f32.mxu1 %vm6286_vm0, %v6287_v11  ;;  %5978 = vmatpush3.bf16.msra.mxu1 %v6802_v1  ;;  %v6880_v61 = vpack.c.bf16 %v5161_v58, %v5160_v52 }
 0x9c3   : > { %5979 = vmatprep.subr.bf16.mxu1 %v6285_v3 }
 0x9c6   : > { %5981 = vmatpush3.bf16.msra.mxu1 %v6812_v2 }
 0x9c7   : > { %5988 = vmatprep.subr.bf16.mxu1 %v6285_v3 }
 0x9c9   : > { %5631 = vmatmul.mubr.msk.f32.vlgmr.msra.gmra.mrb[18].mxu1 %vm623_vm1, %v6496_v18 }
 0x9ca   : > { %5652 = vmatprep.mubr.msk.f32.mxu1 %vm6286_vm0, %v6287_v11 }
 0xa94   : > { %v1986_v20 = vpop.f32.mrb[16].mxu1 }
 0xa95   : > { %v5616_v21 = vpop.f32.mrb[17].mxu1  ;;  %5620 = vmatmul.mubr.msk.f32.vlgmr.msra.gmra.mrb[16].mxu0 %vm859_vm2, %v1986_v20 }
 0xa96   : > { %5984 = vmatpush3.bf16.msra.mxu0 %v6826_v14  ;;  %5641 = vmatprep.mubr.msk.f32.mxu0 %vm6286_vm0, %v6287_v11 }
 0xa97   : > { %5985 = vmatprep.subr.bf16.mxu0 %v6285_v3 }
 0xa9a   : > { %5987 = vmatpush3.bf16.msra.mxu0 %v6836_v26 }
 0xa9b   : > { %5655 = vmatprep.subr.mxu0 %v6287_v11 }
 0xa9c   : > { %v2145_v28 = vpop.f32.mrb[18].mxu1 }
 0xa9d   : > { %5642 = vmatmul.mubr.msk.f32.vlgmr.msra.gmra.mrb[18].mxu0 %vm623_vm1, %v6496_v18  ;;  %v5632_v29 = vpop.f32.mrb[19].mxu1  ;;  %v2146_v47 = vadd.f32 %v6856_v39, %v2145_v28  ;;  %v6894_v28 = vld [vmem:[%s7318_s7 + $0x3] ss:$0 sm:$0xff] }
 0xa9e   : > { %5657 = vmatprep.mubr.msk.f32.mxu0 %vm6286_vm0, %v6287_v11 }
 0xb68   : > { %v2061_v32 = vpop.f32.mrb[16].mxu0 }
 0xb69   : > { %v2065_v33 = vadd.f32 %v2061_v32, %v6738_v5  ;;  %v5621_v35 = vpop.f32.mrb[17].mxu0  ;;  %v5158_v5 = vld [vmem:[%s7317_s6 + $0x60] sm:$0xff] }
 0xb6a   : > { %v6874_v55 = vpack.c.bf16 %v5159_v51, %v5158_v5  ;;  %v6900_v35 = vld [vmem:[%s7319_s8 + $0x18] sm:$0xff] }
 0xb6c   : > { %5990 = vmatpush3.bf16.msra.mxu1 %v6874_v55 }
 0xb6d   : > { %5991 = vmatprep.subr.bf16.mxu1 %v6285_v3 }
 0xb70   : > { %v2228_v40 = vpop.f32.mrb[18].mxu0  ;;  %5993 = vmatpush3.bf16.msra.mxu1 %v6880_v61 }
 0xb71   : > { %v2229_v42 = vadd.f32 %v6851_v36, %v2228_v40  ;;  %v5643_v46 = vpop.f32.mrb[19].mxu0  ;;  %5665 = vmatprep.subr.mxu1 %v6287_v11 }
 0xb73   : > { %5656 = vmatpush3.xpose.msk.msra.mxu0 %vm859_vm2, %v2229_v42  ;;  %5653 = vmatmul.mubr.msk.f32.vlgmr.msra.gmra.mrb[20].mxu1 %vm623_vm1, %v6496_v18 }
 0xb74   : > { %5660 = vmatprep.subr.mxu0 %v6287_v11  ;;  %5667 = vmatprep.mubr.msk.f32.mxu1 %vm6286_vm0, %v6287_v11 }
 0xb75   : > { %5666 = vmatpush3.msra.mxu1 %v6900_v35 }
 0xb76   : > { %5658 = vmatmul.mubr.msk.f32.vlgmr.msra.gmra.mrb[20].mxu0 %vm859_vm2, %v2146_v47  ;;  %6000 = vmatprep.subr.bf16.mxu1 %v6285_v3 }
 0xb77   : > { %5662 = vmatprep.mubr.msk.f32.mxu0 %vm6286_vm0, %v6287_v11 }
 0xc46   : > { %v2311_v21 = vpop.f32.mrb[20].mxu1 }
 0xc47   : > { %v5654_v29 = vpop.f32.mrb[21].mxu1  ;;  %v2312_v32 = vadd.f32 %v6894_v28, %v2311_v21 }
 0xc49   : > { %v2387_v0 = vpop.f32.mrb[20].mxu0  ;;  %5661 = vmatpush3.msra.mxu0 %v2312_v32  ;;  %v2591_v32 = vld [vmem:[%s7323_s12] sm:$0xff] }
 0xc4a   : > { %v5659_v54 = vpop.f32.mrb[21].mxu0  ;;  %v2391_v37 = vsel %vm859_vm2, %v2387_v0, -inf  ;;  %5994 = vmatprep.subr.bf16.mxu0 %v6285_v3 }
 0xc4b   : > { %2392 = vmax.xlane.f32.xlu0 %v2391_v37 }
 0xcd8   : > { %v2393_v6 = vpop.xlane.xlu0 %2392 }
 0xcd9   : > { %v2394_v9 = vsub.f32 %v2387_v0, %v2393_v6 }
 0xcdb   : > { %v2395_v16 = vmul.f32 1.442695, %v2394_v9 }
 0xcdd   : > { %6161 = vpow2.f32 %v2395_v16 }
 0xce7   : > { %v6162_v17 = vpop.eup %6161 }
 0xce8   : > { %v2397_v20 = vsel %vm859_vm2, %v6162_v17, 0.0 }
 0xce9   : > { %2398 = vadd.xlane.f32.xlu1 %v2397_v20 }
 0xd76   : > { %v2399_v40 = vpop.xlane.xlu1 %2398 }
 0xd77   : > { %6163 = vrcp.f32 %v2399_v40 }
 0xd81   : > { %v6164_v42 = vpop.eup %6163 }
 0xd82   : > { %v2401_v46 = vmul.f32 %v6164_v42, %v6162_v17  ;;  %v2594_v42 = vld [vmem:[%s7323_s12 + $0x18] sm:$0xff] }
 0xd84   : > { %5663 = vmatmul.mubr.msk.f32.vlgmr.msra.gmra.mrb[22].mxu0 %vm859_vm2, %v2401_v46  ;;  %v2402_v47 = vadd.f32 %v2401_v46, %v6792_v59  ;;  %v6925_v59 = vld [vmem:[%s7320_s9] ss:$0 sm:$0xff] }
 0xd85   : > { %5678 = vmatprep.mubr.msk.f32.mxu0 %vm6286_vm0, %v6287_v11 }
 0xd86   : > { %v2795_v5 = vmul.f32 0.25, %v2402_v47  ;;  %v2676_v47 = vld [vmem:[%s7325_s14] sm:$0xff] }
 0xd88   : > { %2796 = vst.msk [vmem:[%s6915_s21] sm:$0xff] %vm859_vm2, %v2795_v5  ;;  %v2677_v5 = vld [vmem:[%s7325_s14 + $0x8] sm:$0xff] }
 0xe57   : > { %v2472_v51 = vpop.f32.mrb[22].mxu0 }
 0xe58   : > { %v5664_v52 = vpop.f32.mrb[23].mxu0  ;;  %5668 = vmatmul.mubr.msk.f32.vlgmr.msra.gmra.mrb[22].mxu1 %vm859_vm2, %v2472_v51  ;;  %v2678_v51 = vld [vmem:[%s7325_s14 + $0x10] sm:$0xff] }
 0xe59   : > { %5697 = vmatprep.mubr.msk.f32.mxu1 %vm6286_vm0, %v6287_v11  ;;  %v6960_v52 = vpack.c.bf16 %v2677_v5, %v2676_v47  ;;  %v2683_v47 = vld [vmem:[%s7325_s14 + $0x38] sm:$0xff] }
 0xe5b   : > { %6002 = vmatpush3.bf16.msra.mxu1 %v6960_v52 }
 0xe5c   : > { %6003 = vmatprep.subr.bf16.mxu1 %v6285_v3 }
 0xf2b   : > { %v2547_v58 = vpop.f32.mrb[22].mxu1 }
 0xf2c   : > { %v2551_v0 = vadd.f32 %v2547_v58, %v2065_v33  ;;  %v5669_v54 = vpop.f32.mrb[23].mxu1  ;;  %v2592_v33 = vld [vmem:[%s7323_s12 + $0x8] sm:$0xff]  ;;  %v2679_v58 = vld [vmem:[%s7325_s14 + $0x18] sm:$0xff] }
 0xf2d   : > { %v6937_v40 = vpack.c.bf16 %v2592_v33, %v2591_v32  ;;  %v2680_v54 = vld [vmem:[%s7325_s14 + $0x20] sm:$0xff] }
 0xf2e   : > { %v2559_v37 = vadd.f32 %v6925_v59, %v2551_v0  ;;  %v6966_v0 = vpack.c.bf16 %v2679_v58, %v2678_v51  ;;  %v6989_v33 = vld [vmem:[%s7322_s11] ss:$0 sm:$0xff] }
 0xf2f   : > { %5996 = vmatpush3.bf16.msra.mxu0 %v6937_v40 }
 0xf30   : > { %v2560_v6 = vadd.f32 %v2559_v37, %v6496_v18  ;;  %5997 = vmatprep.subr.bf16.mxu0 %v6285_v3  ;;  %v2593_v18 = vld [vmem:[%s7323_s12 + $0x10] sm:$0xff]  ;;  %v2681_v37 = vld [vmem:[%s7325_s14 + $0x28] sm:$0xff]  ;;  %6005 = vmatpush3.bf16.msra.mxu1 %v6966_v0 }
 0xf31   : > { %v6947_v46 = vpack.c.bf16 %v2594_v42, %v2593_v18  ;;  %6006 = vmatprep.subr.bf16.mxu1 %v6285_v3 }
 0xf32   : > { %v2563_v9 = vsel %vm623_vm1, %v2560_v6, 0.0 }
 0xf33   : > { %2564 = vadd.xlane.f32.xlu0 %v2563_v9  ;;  %5999 = vmatpush3.bf16.msra.mxu0 %v6947_v46 }
 0xf34   : > { %6012 = vmatprep.subr.bf16.mxu0 %v6285_v3 }
 0xfc0   : > { %v2565_v16 = vpop.xlane.xlu0 %2564 }
 0xfc1   : > { %v2567_v17 = vmul.f32 0.03125, %v2565_v16 }
 0xfc3   : > { %v2568_v20 = vsub.f32 %v2560_v6, %v2567_v17  ;;  %v6976_v6 = vpack.c.bf16 %v2681_v37, %v2680_v54  ;;  %v7026_v37 = vld [vmem:[%s7326_s15] ss:$0 sm:$0xff] }
 0xfc5   : > { %v2569_v21 = vmul.f32 %v2568_v20, %v2568_v20  ;;  %6008 = vmatpush3.bf16.msra.mxu1 %v6976_v6 }
 0xfc6   : > { %6009 = vmatprep.subr.bf16.mxu1 %v6285_v3 }
 0xfc7   : > { %v2570_v29 = vsel %vm623_vm1, %v2569_v21, 0.0 }
 0xfc8   : > { %2571 = vadd.xlane.f32.xlu1 %v2570_v29  ;;  %v6984_v29 = vld [vmem:[%s7321_s10] ss:$0 sm:$0xff] }
0x1055   : > { %v2572_v9 = vpop.xlane.xlu1 %2571 }
0x1056   : > { %v2573_v16 = vmul.f32 0.03125, %v2572_v9 }
0x1058   : > { %v2574_v17 = vadd.f32 1e-05, %v2573_v16 }
0x105a   : > { %6165 = vrsqrt.f32 %v2574_v17 }
0x1064   : > { %v6166_v21 = vpop.eup %6165 }
0x1065   : > { %v2576_v32 = vmul.f32 %v6166_v21, %v2568_v20  ;;  %v2682_v20 = vld [vmem:[%s7325_s14 + $0x30] sm:$0xff] }
0x1066   : > { %v7006_v5 = vpack.c.bf16 %v2683_v47, %v2682_v20 }
0x1067   : > { %v2583_v18 = vmul.f32 %v6984_v29, %v2576_v32 }
0x1068   : > { %6011 = vmatpush3.bf16.msra.mxu1 %v7006_v5 }
0x1069   : > { %v2590_v42 = vadd.f32 %v6989_v33, %v2583_v18  ;;  %6024 = vmatprep.subr.bf16.mxu1 %v6285_v3 }
0x106b   : > { %5679 = vmatmul.mubr.msk.f32.vlgmr.msra.gmra.mrb[24].mxu0 %vm623_vm1, %v2590_v42 }
0x106c   : > { %6014 = vmatpush3.bf16.msra.mxu0 %v6461_v8  ;;  %5708 = vmatprep.mubr.msk.f32.mxu0 %vm6286_vm0, %v6287_v11  ;;  %v7013_v8 = vld [vmem:[%s7324_s13] ss:$0 sm:$0xff] }
0x106d   : > { %6015 = vmatprep.subr.bf16.mxu0 %v6285_v3 }
0x1070   : > { %6017 = vmatpush3.bf16.msra.mxu0 %v6479_v13 }
0x1071   : > { %6018 = vmatprep.subr.bf16.mxu0 %v6285_v3 }
0x113e   : > { %v2671_v13 = vpop.f32.mrb[24].mxu0 }
0x113f   : > { %v2672_v51 = vadd.f32 %v7013_v8, %v2671_v13  ;;  %v5680_v58 = vpop.f32.mrb[25].mxu0 }
0x1141   : > { %v2675_v54 = vmax.f32 %v2672_v51, 0.0 }
0x1143   : > { %5698 = vmatmul.mubr.msk.f32.vlgmr.msra.gmra.mrb[24].mxu1 %vm2691_vm3, %v2675_v54 }
0x1144   : > { %6026 = vmatpush3.bf16.msra.mxu1 %v6498_v19  ;;  %5730 = vmatprep.mubr.msk.f32.mxu1 %vm6286_vm0, %v6287_v11 }
0x1145   : > { %6027 = vmatprep.subr.bf16.mxu1 %v6285_v3 }
0x1148   : > { %6029 = vmatpush3.bf16.msra.mxu1 %v6515_v22 }
0x1149   : > { %5738 = vmatprep.subr.mxu1 %v6287_v11 }
0x1216   : > { %v2761_v9 = vpop.f32.mrb[24].mxu1 }
0x1217   : > { %v2762_v16 = vadd.f32 %v7026_v37, %v2761_v9  ;;  %v5699_v17 = vpop.f32.mrb[25].mxu1  ;;  %v7034_v9 = vld [vmem:[%s7327_s16] ss:$0 sm:$0xff] }
0x1219   : > { %v2765_v21 = vadd.f32 %v2762_v16, %v2590_v42  ;;  %v7039_v16 = vld [vmem:[%s7328_s17] ss:$0 sm:$0xff] }
0x121b   : > { %v2768_v19 = vsel %vm623_vm1, %v2765_v21, 0.0 }
0x121c   : > { %2769 = vadd.xlane.f32.xlu0 %v2768_v19 }
0x12a9   : > { %v2770_v32 = vpop.xlane.xlu0 %2769 }
0x12aa   : > { %v2771_v18 = vmul.f32 0.03125, %v2770_v32 }
0x12ac   : > { %v2772_v20 = vsub.f32 %v2765_v21, %v2771_v18 }
0x12ae   : > { %v2773_v47 = vmul.f32 %v2772_v20, %v2772_v20 }
0x12b0   : > { %v2774_v22 = vsel %vm623_vm1, %v2773_v47, 0.0 }
0x12b1   : > { %2775 = vadd.xlane.f32.xlu1 %v2774_v22 }
0x133e   : > { %v2776_v13 = vpop.xlane.xlu1 %2775 }
0x133f   : > { %v2777_v51 = vmul.f32 0.03125, %v2776_v13 }
0x1341   : > { %v2778_v58 = vadd.f32 1e-05, %v2777_v51 }
0x1343   : > { %6167 = vrsqrt.f32 %v2778_v58 }
0x134d   : > { %v6168_v54 = vpop.eup %6167 }
0x134e   : > { %v2780_v42 = vmul.f32 %v6168_v54, %v2772_v20 }
0x1350   : > { %v2787_v17 = vmul.f32 %v7034_v9, %v2780_v42 }
0x1352   : > { %v7043_v21 = vadd.f32 %v7039_v16, %v2787_v17 }
0x1354   : > { %5709 = vmatmul.mubr.msk.f32.vlgmr.msra.gmra.mrb[26].mxu0 %vm623_vm1, %v7043_v21  ;;  %5731 = vmatmul.mubr.msk.f32.vlgmr.msra.gmra.mrb[26].mxu1 %vm623_vm1, %v7043_v21 }
0x1355   : > { %6020 = vmatpush3.bf16.msra.mxu0 %v6448_v4  ;;  %5719 = vmatprep.mubr.msk.f32.mxu0 %vm6286_vm0, %v6287_v11 }
0x1356   : > { %6021 = vmatprep.subr.bf16.mxu0 %v6285_v3  ;;  %5740 = vmatprep.mubr.msk.f32.mxu1 %vm6286_vm0, %v6287_v11 }
0x1359   : > { %6023 = vmatpush3.bf16.msra.mxu0 %v6474_v12 }
0x135a   : > { %5733 = vmatprep.subr.mxu0 %v6287_v11 }
0x135c   : > { %5720 = vmatmul.mubr.msk.f32.vlgmr.msra.gmra.mrb[28].mxu0 %vm623_vm1, %v7043_v21 }
0x135d   : > { %5735 = vmatprep.mubr.msk.f32.mxu0 %vm6286_vm0, %v6287_v11 }
0x1427   : > { %v2877_v19 = vpop.f32.mrb[26].mxu0  ;;  %v3039_v4 = vpop.f32.mrb[26].mxu1 }
0x1428   : > { %v3040_v32 = vadd.f32 %v6544_v31, %v3039_v4  ;;  %v5710_v18 = vpop.f32.mrb[27].mxu0  ;;  %v5732_v20 = vpop.f32.mrb[27].mxu1  ;;  %v2878_v13 = vadd.f32 %v6534_v24, %v2877_v19 }
0x142a   : > { %5739 = vmatpush3.msra.mxu1 %v3040_v32 }
0x142b   : > { %6036 = vmatprep.subr.bf16.mxu1 %v6285_v3 }
0x142f   : > { %v2958_v47 = vpop.f32.mrb[28].mxu0 }
0x1430   : > { %v2959_v12 = vadd.f32 %v6529_v23, %v2958_v47  ;;  %v5721_v22 = vpop.f32.mrb[29].mxu0 }
0x1432   : > { %5734 = vmatpush3.xpose.msk.msra.mxu0 %vm859_vm2, %v2959_v12 }
0x1433   : > { %6030 = vmatprep.subr.bf16.mxu0 %v6285_v3 }
0x1435   : > { %5736 = vmatmul.mubr.msk.f32.vlgmr.msra.gmra.mrb[30].mxu0 %vm859_vm2, %v2878_v13 }
0x1436   : > { %6032 = vmatpush3.bf16.msra.mxu0 %v6558_v45  ;;  %5751 = vmatprep.mubr.msk.f32.mxu0 %vm6286_vm0, %v6287_v11 }
0x1437   : > { %6033 = vmatprep.subr.bf16.mxu0 %v6285_v3 }
0x143a   : > { %6035 = vmatpush3.bf16.msra.mxu0 %v6568_v48 }
0x143b   : > { %6042 = vmatprep.subr.bf16.mxu0 %v6285_v3 }
0x143d   : > { %5752 = vmatmul.mubr.msk.f32.vlgmr.msra.gmra.mrb[32].mxu0 %vm623_vm1, %v7043_v21 }
0x143e   : > { %6044 = vmatpush3.bf16.msra.mxu0 %v6632_v10  ;;  %5773 = vmatprep.mubr.msk.f32.mxu0 %vm6286_vm0, %v6287_v11 }
0x143f   : > { %6045 = vmatprep.subr.bf16.mxu0 %v6285_v3 }
0x1442   : > { %6047 = vmatpush3.bf16.msra.mxu0 %v6638_v15 }
0x1443   : > { %5786 = vmatprep.subr.mxu0 %v6287_v11 }
0x1445   : > { %5774 = vmatmul.mubr.msk.f32.vlgmr.msra.gmra.mrb[34].mxu0 %vm623_vm1, %v7043_v21 }
0x1446   : > { %5787 = vmatpush3.msra.mxu0 %v6659_v34  ;;  %5788 = vmatprep.mubr.msk.f32.mxu0 %vm6286_vm0, %v6287_v11 }
0x1447   : > { %6048 = vmatprep.subr.bf16.mxu0 %v6285_v3 }
0x1508   : > { %v3115_v23 = vpop.f32.mrb[30].mxu0 }
0x1509   : > { %v5737_v24 = vpop.f32.mrb[31].mxu0  ;;  %v3119_v31 = vsel %vm859_vm2, %v3115_v23, -inf }
0x150a   : > { %3120 = vmax.xlane.f32.xlu0 %v3119_v31 }
0x1510   : > { %v3281_v45 = vpop.f32.mrb[32].mxu0 }
0x1511   : > { %v5753_v48 = vpop.f32.mrb[33].mxu0  ;;  %v3282_v12 = vadd.f32 %v6614_v63, %v3281_v45 }
0x1518   : > { %v3443_v10 = vpop.f32.mrb[34].mxu0 }
0x1519   : > { %v5775_v15 = vpop.f32.mrb[35].mxu0 }
0x1597   : > { %v3121_v51 = vpop.xlane.xlu0 %3120 }
0x1598   : > { %v3122_v58 = vsub.f32 %v3115_v23, %v3121_v51 }
0x159a   : > { %v3123_v54 = vmul.f32 1.442695, %v3122_v58 }
0x159c   : > { %6169 = vpow2.f32 %v3123_v54 }
0x15a6   : > { %v6170_v42 = vpop.eup %6169 }
0x15a7   : > { %v3125_v34 = vsel %vm859_vm2, %v6170_v42, 0.0 }
0x15a8   : > { %3126 = vadd.xlane.f32.xlu1 %v3125_v34 }
0x1635   : > { %v3127_v17 = vpop.xlane.xlu1 %3126 }
0x1636   : > { %6171 = vrcp.f32 %v3127_v17 }
0x1640   : > { %v6172_v19 = vpop.eup %6171 }
0x1641   : > { %v3129_v4 = vmul.f32 %v6172_v19, %v6170_v42 }
0x1643   : > { %5741 = vmatmul.mubr.msk.f32.vlgmr.msra.gmra.mrb[28].mxu1 %vm859_vm2, %v3129_v4 }
0x1644   : > { %6038 = vmatpush3.bf16.msra.mxu1 %v6582_v53  ;;  %5762 = vmatprep.mubr.msk.f32.mxu1 %vm6286_vm0, %v6287_v11 }
0x1645   : > { %6039 = vmatprep.subr.bf16.mxu1 %v6285_v3 }
0x1648   : > { %6041 = vmatpush3.bf16.msra.mxu1 %v6595_v57  ;;  %v3444_v57 = vadd.f32 %v6652_v30, %v3443_v10 }
0x1649   : > { %5776 = vmatprep.subr.mxu1 %v6287_v11 }
0x164b   : > { %5763 = vmatmul.mubr.msk.f32.vlgmr.msra.gmra.mrb[30].mxu1 %vm623_vm1, %v7043_v21 }
0x164c   : > { %5778 = vmatprep.mubr.msk.f32.mxu1 %vm6286_vm0, %v6287_v11 }
0x1716   : > { %v3199_v32 = vpop.f32.mrb[28].mxu1 }
0x1717   : > { %v5742_v18 = vpop.f32.mrb[29].mxu1 }
0x171e   : > { %v3362_v20 = vpop.f32.mrb[30].mxu1 }
0x171f   : > { %v3363_v53 = vadd.f32 %v6609_v62, %v3362_v20  ;;  %v5764_v47 = vpop.f32.mrb[31].mxu1 }
0x1721   : > { %5777 = vmatpush3.xpose.msk.msra.mxu1 %vm859_vm2, %v3363_v53 }
0x1722   : > { %5781 = vmatprep.subr.mxu1 %v6287_v11 }
0x1724   : > { %5779 = vmatmul.mubr.msk.f32.vlgmr.msra.gmra.mrb[32].mxu1 %vm859_vm2, %v3282_v12 }
0x1725   : > { %5782 = vmatpush3.msra.mxu1 %v3444_v57  ;;  %5783 = vmatprep.mubr.msk.f32.mxu1 %vm6286_vm0, %v6287_v11 }
0x1726   : > { %5791 = vmatprep.subr.mxu1 %v6287_v11 }
0x17f7   : > { %v3519_v22 = vpop.f32.mrb[32].mxu1 }
0x17f8   : > { %v5780_v13 = vpop.f32.mrb[33].mxu1  ;;  %v3523_v62 = vsel %vm859_vm2, %v3519_v22, -inf }
0x17f9   : > { %3524 = vmax.xlane.f32.xlu0 %v3523_v62 }
0x1886   : > { %v3525_v23 = vpop.xlane.xlu0 %3524 }
0x1887   : > { %v3526_v24 = vsub.f32 %v3519_v22, %v3525_v23 }
0x1889   : > { %v3527_v63 = vmul.f32 1.442695, %v3526_v24 }
0x188b   : > { %6173 = vpow2.f32 %v3527_v63 }
0x1895   : > { %v6174_v31 = vpop.eup %6173 }
0x1896   : > { %v3529_v30 = vsel %vm859_vm2, %v6174_v31, 0.0 }
0x1897   : > { %3530 = vadd.xlane.f32.xlu1 %v3529_v30 }
0x1924   : > { %v3531_v45 = vpop.xlane.xlu1 %3530 }
0x1925   : > { %6175 = vrcp.f32 %v3531_v45 }
0x192f   : > { %v6176_v48 = vpop.eup %6175 }
0x1930   : > { %v3533_v10 = vmul.f32 %v6176_v48, %v6174_v31 }
0x1932   : > { %5784 = vmatmul.mubr.msk.f32.vlgmr.msra.gmra.mrb[34].mxu1 %vm859_vm2, %v3533_v10 }
0x1933   : > { %5792 = vmatpush3.msra.mxu1 %v6668_v38  ;;  %5793 = vmatprep.mubr.msk.f32.mxu1 %vm6286_vm0, %v6287_v11 }
0x1934   : > { %6054 = vmatprep.subr.bf16.mxu1 %v6285_v3 }
0x1936   : > { %5794 = vmatmul.mubr.msk.f32.vlgmr.msra.gmra.mrb[36].mxu1 %vm859_vm2, %v3199_v32 }
0x1937   : > { %6056 = vmatpush3.bf16.msra.mxu1 %v6681_v41  ;;  %5815 = vmatprep.mubr.msk.f32.mxu1 %vm6286_vm0, %v6287_v11 }
0x1938   : > { %6057 = vmatprep.subr.bf16.mxu1 %v6285_v3 }
0x193b   : > { %6059 = vmatpush3.bf16.msra.mxu1 %v6695_v44 }
0x193c   : > { %5829 = vmatprep.subr.mxu1 %v6287_v11 }
0x193e   : > { %5816 = vmatmul.mubr.msk.f32.vlgmr.msra.gmra.mrb[38].mxu1 %vm623_vm1, %v7043_v21 }
0x193f   : > { %5831 = vmatprep.mubr.msk.f32.mxu1 %vm6286_vm0, %v6287_v11 }
0x1a05   : > { %v3603_v38 = vpop.f32.mrb[34].mxu1 }
0x1a06   : > { %v5785_v15 = vpop.f32.mrb[35].mxu1  ;;  %5789 = vmatmul.mubr.msk.f32.vlgmr.msra.gmra.mrb[36].mxu0 %vm859_vm2, %v3603_v38 }
0x1a07   : > { %6050 = vmatpush3.bf16.msra.mxu0 %v6709_v49  ;;  %5804 = vmatprep.mubr.msk.f32.mxu0 %vm6286_vm0, %v6287_v11 }
0x1a08   : > { %6051 = vmatprep.subr.bf16.mxu0 %v6285_v3 }
0x1a09   : > { %v3750_v41 = vpop.f32.mrb[36].mxu1 }
0x1a0a   : > { %v5795_v44 = vpop.f32.mrb[37].mxu1 }
0x1a0b   : > { %6053 = vmatpush3.bf16.msra.mxu0 %v6719_v56 }
0x1a0c   : > { %6060 = vmatprep.subr.bf16.mxu0 %v6285_v3 }
0x1a0e   : > { %5805 = vmatmul.mubr.msk.f32.vlgmr.msra.gmra.mrb[38].mxu0 %vm623_vm1, %v7043_v21 }
0x1a0f   : > { %6062 = vmatpush3.bf16.msra.mxu0 %v6758_v25  ;;  %5826 = vmatprep.mubr.msk.f32.mxu0 %vm6286_vm0, %v6287_v11 }
0x1a10   : > { %6063 = vmatprep.subr.bf16.mxu0 %v6285_v3 }
0x1a11   : > { %v3912_v49 = vpop.f32.mrb[38].mxu1 }
0x1a12   : > { %v3913_v51 = vadd.f32 %v6733_v60, %v3912_v49  ;;  %v5817_v58 = vpop.f32.mrb[39].mxu1 }
0x1a13   : > { %6065 = vmatpush3.bf16.msra.mxu0 %v6764_v27 }
0x1a14   : > { %5830 = vmatpush3.xpose.msk.msra.mxu1 %vm859_vm2, %v3913_v51  ;;  %5839 = vmatprep.subr.mxu0 %v6287_v11 }
0x1a15   : > { %5834 = vmatprep.subr.mxu1 %v6287_v11 }
0x1a16   : > { %5827 = vmatmul.mubr.msk.f32.vlgmr.msra.gmra.mrb[40].mxu0 %vm623_vm1, %v7043_v21 }
0x1a17   : > { %5840 = vmatpush3.msra.mxu0 %v6784_v50  ;;  %5841 = vmatprep.mubr.msk.f32.mxu0 %vm6286_vm0, %v6287_v11 }
0x1a18   : > { %6072 = vmatprep.subr.bf16.mxu0 %v6285_v3 }
0x1ad9   : > { %v3677_v56 = vpop.f32.mrb[36].mxu0 }
0x1ada   : > { %v3751_v60 = vadd.f32 %v3750_v41, %v3677_v56  ;;  %v5790_v25 = vpop.f32.mrb[37].mxu0 }
0x1ae1   : > { %v3831_v27 = vpop.f32.mrb[38].mxu0 }
0x1ae2   : > { %v3832_v54 = vadd.f32 %v6743_v7, %v3831_v27  ;;  %v5806_v42 = vpop.f32.mrb[39].mxu0 }
0x1ae4   : > { %5832 = vmatmul.mubr.msk.f32.vlgmr.msra.gmra.mrb[40].mxu1 %vm859_vm2, %v3832_v54 }
0x1ae5   : > { %5836 = vmatprep.mubr.msk.f32.mxu1 %vm6286_vm0, %v6287_v11 }
0x1ae9   : > { %v3993_v34 = vpop.f32.mrb[40].mxu0 }
0x1aea   : > { %v3994_v50 = vadd.f32 %v6778_v43, %v3993_v34  ;;  %v5828_v17 = vpop.f32.mrb[41].mxu0 }
0x1aec   : > { %5835 = vmatpush3.msra.mxu1 %v3994_v50 }
0x1aed   : > { %6066 = vmatprep.subr.bf16.mxu1 %v6285_v3 }
0x1bb7   : > { %v4069_v19 = vpop.f32.mrb[40].mxu1 }
0x1bb8   : > { %v5833_v4 = vpop.f32.mrb[41].mxu1  ;;  %v4073_v32 = vsel %vm859_vm2, %v4069_v19, -inf }
0x1bb9   : > { %4074 = vmax.xlane.f32.xlu0 %v4073_v32 }
0x1c46   : > { %v4075_v18 = vpop.xlane.xlu0 %4074 }
0x1c47   : > { %v4076_v7 = vsub.f32 %v4069_v19, %v4075_v18 }
0x1c49   : > { %v4077_v20 = vmul.f32 1.442695, %v4076_v7 }
0x1c4b   : > { %6177 = vpow2.f32 %v4077_v20 }
0x1c55   : > { %v6178_v53 = vpop.eup %6177 }
0x1c56   : > { %v4079_v47 = vsel %vm859_vm2, %v6178_v53, 0.0 }
0x1c57   : > { %4080 = vadd.xlane.f32.xlu1 %v4079_v47 }
0x1ce4   : > { %v4081_v12 = vpop.xlane.xlu1 %4080 }
0x1ce5   : > { %6179 = vrcp.f32 %v4081_v12 }
0x1cef   : > { %v6180_v43 = vpop.eup %6179 }
0x1cf0   : > { %v4083_v57 = vmul.f32 %v6180_v43, %v6178_v53 }
0x1cf2   : > { %5837 = vmatmul.mubr.msk.f32.vlgmr.msra.gmra.mrb[42].mxu1 %vm859_vm2, %v4083_v57 }
0x1cf3   : > { %6068 = vmatpush3.bf16.msra.mxu1 %v6802_v1  ;;  %5852 = vmatprep.mubr.msk.f32.mxu1 %vm6286_vm0, %v6287_v11 }
0x1cf4   : > { %6069 = vmatprep.subr.bf16.mxu1 %v6285_v3 }
0x1cf7   : > { %6071 = vmatpush3.bf16.msra.mxu1 %v6812_v2 }
0x1cf8   : > { %6078 = vmatprep.subr.bf16.mxu1 %v6285_v3 }
0x1cfa   : > { %5853 = vmatmul.mubr.msk.f32.vlgmr.msra.gmra.mrb[44].mxu1 %vm623_vm1, %v7043_v21 }
0x1cfb   : > { %6080 = vmatpush3.bf16.msra.mxu1 %v6874_v55  ;;  %5874 = vmatprep.mubr.msk.f32.mxu1 %vm6286_vm0, %v6287_v11 }
0x1cfc   : > { %6081 = vmatprep.subr.bf16.mxu1 %v6285_v3 }
0x1cff   : > { %6083 = vmatpush3.bf16.msra.mxu1 %v6880_v61 }
0x1d00   : > { %5887 = vmatprep.subr.mxu1 %v6287_v11 }
0x1d02   : > { %5875 = vmatmul.mubr.msk.f32.vlgmr.msra.gmra.mrb[46].mxu1 %vm623_vm1, %v7043_v21 }
0x1d03   : > { %5888 = vmatpush3.msra.mxu1 %v6900_v35  ;;  %5889 = vmatprep.mubr.msk.f32.mxu1 %vm6286_vm0, %v6287_v11 }
0x1d04   : > { %6090 = vmatprep.subr.bf16.mxu1 %v6285_v3 }
0x1dc5   : > { %v4153_v1 = vpop.f32.mrb[42].mxu1 }
0x1dc6   : > { %v5838_v2 = vpop.f32.mrb[43].mxu1  ;;  %5842 = vmatmul.mubr.msk.f32.vlgmr.msra.gmra.mrb[42].mxu0 %vm859_vm2, %v4153_v1 }
0x1dc7   : > { %6074 = vmatpush3.bf16.msra.mxu0 %v6826_v14  ;;  %5863 = vmatprep.mubr.msk.f32.mxu0 %vm6286_vm0, %v6287_v11 }
0x1dc8   : > { %6075 = vmatprep.subr.bf16.mxu0 %v6285_v3 }
0x1dcb   : > { %6077 = vmatpush3.bf16.msra.mxu0 %v6836_v26 }
0x1dcc   : > { %5877 = vmatprep.subr.mxu0 %v6287_v11 }
0x1dcd   : > { %v4309_v55 = vpop.f32.mrb[44].mxu1 }
0x1dce   : > { %v5854_v61 = vpop.f32.mrb[45].mxu1  ;;  %5864 = vmatmul.mubr.msk.f32.vlgmr.msra.gmra.mrb[44].mxu0 %vm623_vm1, %v7043_v21  ;;  %v4310_v26 = vadd.f32 %v6856_v39, %v4309_v55 }
0x1dcf   : > { %5879 = vmatprep.mubr.msk.f32.mxu0 %vm6286_vm0, %v6287_v11 }
0x1dd5   : > { %v4471_v35 = vpop.f32.mrb[46].mxu1 }
0x1dd6   : > { %v5876_v22 = vpop.f32.mrb[47].mxu1  ;;  %v4472_v31 = vadd.f32 %v6894_v28, %v4471_v35 }
0x1e99   : > { %v4227_v14 = vpop.f32.mrb[42].mxu0 }
0x1e9a   : > { %v4231_v13 = vadd.f32 %v4227_v14, %v3751_v60  ;;  %v5843_v62 = vpop.f32.mrb[43].mxu0 }
0x1ea1   : > { %v4390_v23 = vpop.f32.mrb[44].mxu0 }
0x1ea2   : > { %v4391_v24 = vadd.f32 %v6851_v36, %v4390_v23  ;;  %v5865_v63 = vpop.f32.mrb[45].mxu0 }
0x1ea4   : > { %5878 = vmatpush3.xpose.msk.msra.mxu0 %vm859_vm2, %v4391_v24 }
0x1ea5   : > { %5882 = vmatprep.subr.mxu0 %v6287_v11 }
0x1ea7   : > { %5880 = vmatmul.mubr.msk.f32.vlgmr.msra.gmra.mrb[46].mxu0 %vm859_vm2, %v4310_v26 }
0x1ea8   : > { %5883 = vmatpush3.msra.mxu0 %v4472_v31  ;;  %5884 = vmatprep.mubr.msk.f32.mxu0 %vm6286_vm0, %v6287_v11 }
0x1ea9   : > { %6084 = vmatprep.subr.bf16.mxu0 %v6285_v3 }
0x1f7a   : > { %v4547_v30 = vpop.f32.mrb[46].mxu0 }
0x1f7b   : > { %v5881_v45 = vpop.f32.mrb[47].mxu0  ;;  %v4551_v36 = vsel %vm859_vm2, %v4547_v30, -inf }
0x1f7c   : > { %4552 = vmax.xlane.f32.xlu0 %v4551_v36 }
0x2009   : > { %v4553_v48 = vpop.xlane.xlu0 %4552 }
0x200a   : > { %v4554_v10 = vsub.f32 %v4547_v30, %v4553_v48 }
0x200c   : > { %v4555_v39 = vmul.f32 1.442695, %v4554_v10 }
0x200e   : > { %6181 = vpow2.f32 %v4555_v39 }
0x2018   : > { %v6182_v38 = vpop.eup %6181 }
0x2019   : > { %v4557_v28 = vsel %vm859_vm2, %v6182_v38, 0.0 }
0x201a   : > { %4558 = vadd.xlane.f32.xlu1 %v4557_v28 }
0x20a7   : > { %v4559_v15 = vpop.xlane.xlu1 %4558 }
0x20a8   : > { %6183 = vrcp.f32 %v4559_v15 }
0x20b2   : > { %v6184_v41 = vpop.eup %6183 }
0x20b3   : > { %v4561_v44 = vmul.f32 %v6184_v41, %v6182_v38 }
0x20b5   : > { %5885 = vmatmul.mubr.msk.f32.vlgmr.msra.gmra.mrb[48].mxu0 %vm859_vm2, %v4561_v44 }
0x20b6   : > { %6086 = vmatpush3.bf16.msra.mxu0 %v6937_v40  ;;  %5900 = vmatprep.mubr.msk.f32.mxu0 %vm6286_vm0, %v6287_v11 }
0x20b7   : > { %6087 = vmatprep.subr.bf16.mxu0 %v6285_v3 }
0x20ba   : > { %6089 = vmatpush3.bf16.msra.mxu0 %v6947_v46 }
0x2188   : > { %v4631_v49 = vpop.f32.mrb[48].mxu0 }
0x2189   : > { %v5886_v51 = vpop.f32.mrb[49].mxu0  ;;  %5890 = vmatmul.mubr.msk.f32.vlgmr.msra.gmra.mrb[48].mxu1 %vm859_vm2, %v4631_v49 }
0x218a   : > { %6092 = vmatpush3.bf16.msra.mxu1 %v6960_v52  ;;  %5919 = vmatprep.mubr.msk.f32.mxu1 %vm6286_vm0, %v6287_v11 }
0x218b   : > { %6093 = vmatprep.subr.bf16.mxu1 %v6285_v3 }
0x218e   : > { %6095 = vmatpush3.bf16.msra.mxu1 %v6966_v0 }
0x218f   : > { %6096 = vmatprep.subr.bf16.mxu1 %v6285_v3 }
0x2192   : > { %6098 = vmatpush3.bf16.msra.mxu1 %v6976_v6 }
0x2193   : > { %6099 = vmatprep.subr.bf16.mxu1 %v6285_v3 }
0x2196   : > { %6101 = vmatpush3.bf16.msra.mxu1 %v7006_v5 }
0x225c   : > { %v4705_v40 = vpop.f32.mrb[48].mxu1 }
0x225d   : > { %v4709_v46 = vadd.f32 %v4705_v40, %v4231_v13  ;;  %v5891_v58 = vpop.f32.mrb[49].mxu1 }
0x225f   : > { %v4717_v52 = vadd.f32 %v6925_v59, %v4709_v46 }
0x2261   : > { %v4718_v56 = vadd.f32 %v4717_v52, %v7043_v21 }
0x2263   : > { %v4721_v11 = vsel %vm623_vm1, %v4718_v56, 0.0 }
0x2264   : > { %4722 = vadd.xlane.f32.xlu0 %v4721_v11 }
0x22f1   : > { %v4723_v60 = vpop.xlane.xlu0 %4722 }
0x22f2   : > { %v4724_v0 = vmul.f32 0.03125, %v4723_v60 }
0x22f4   : > { %v4725_v25 = vsub.f32 %v4718_v56, %v4724_v0 }
0x22f6   : > { %v4726_v27 = vmul.f32 %v4725_v25, %v4725_v25 }
0x22f8   : > { %v4727_v6 = vsel %vm623_vm1, %v4726_v27, 0.0 }
0x22f9   : > { %4728 = vadd.xlane.f32.xlu1 %v4727_v6 }
0x2386   : > { %v4729_v3 = vpop.xlane.xlu1 %4728 }
0x2387   : > { %v4730_v54 = vmul.f32 0.03125, %v4729_v3 }
0x2389   : > { %v4731_v5 = vadd.f32 1e-05, %v4730_v54 }
0x238b   : > { %6185 = vrsqrt.f32 %v4731_v5 }
0x2395   : > { %v6186_v42 = vpop.eup %6185 }
0x2396   : > { %v4733_v34 = vmul.f32 %v6186_v42, %v4725_v25 }
0x2398   : > { %v4740_v59 = vmul.f32 %v6984_v29, %v4733_v34 }
0x239a   : > { %v4747_v21 = vadd.f32 %v6989_v33, %v4740_v59 }
0x239c   : > { %5901 = vmatmul.mubr.msk.f32.vlgmr.msra.gmra.mrb[50].mxu0 %vm623_vm1, %v4747_v21 }
0x246f   : > { %v4828_v50 = vpop.f32.mrb[50].mxu0 }
0x2470   : > { %v4829_v17 = vadd.f32 %v7013_v8, %v4828_v50  ;;  %v5902_v19 = vpop.f32.mrb[51].mxu0 }
0x2472   : > { %v4832_v4 = vmax.f32 %v4829_v17, 0.0 }
0x2474   : > { %5920 = vmatmul.mubr.msk.f32.vlgmr.msra.gmra.mrb[50].mxu1 %vm2691_vm3, %v4832_v4 }
0x2547   : > { %v4917_v32 = vpop.f32.mrb[50].mxu1 }
0x2548   : > { %v4918_v18 = vadd.f32 %v7026_v37, %v4917_v32  ;;  %v5921_v7 = vpop.f32.mrb[51].mxu1 }
0x254a   : > { %v4921_v29 = vadd.f32 %v4918_v18, %v4747_v21 }
0x254c   : > { %v4924_v33 = vsel %vm623_vm1, %v4921_v29, 0.0 }
0x254d   : > { %4925 = vadd.xlane.f32.xlu0 %v4924_v33 }
0x25da   : > { %v4926_v20 = vpop.xlane.xlu0 %4925 }
0x25db   : > { %v4927_v53 = vmul.f32 0.03125, %v4926_v20 }
0x25dd   : > { %v4928_v8 = vsub.f32 %v4921_v29, %v4927_v53 }
0x25df   : > { %v4929_v47 = vmul.f32 %v4928_v8, %v4928_v8 }
0x25e1   : > { %v4930_v12 = vsel %vm623_vm1, %v4929_v47, 0.0 }
0x25e2   : > { %4931 = vadd.xlane.f32.xlu1 %v4930_v12 }
0x25e3   : > { %6202 = shalt.err (!%p6199_p3)
}
0x25e4   : > { %s6203_s21 = scalar_lea.hbm %s7237_s22, 128  ;;  %s6207_s19 = scalar_lea.hbm %s7363_s29, 256 }
0x25e5   : > { %p6204_p4 = scmp.ne.s32.totalorder %s7237_s22, %s6203_s21  ;;  %p6208_p9 = scmp.lt.u32.totalorder %s7237_s22, %s7363_s29 }
0x25e6   : > { %p6209_p10 = scmp.lt.u32.totalorder %s6207_s19, %s6203_s21  ;;  %p6211_p12 = scmp.lt.u32.totalorder %s6203_s21, %s7237_s22 }
0x25e7   : > { %p6205_p7 = pnand %p6204_p4, %p6428_p5 }
0x25e8   : > { %p6210_p11 = por %p6209_p10, %p6208_p9 }
0x25e9   : > { %p6206_p8 = pneg %p6205_p7 }
0x25ea   : > { %p6212_p13 = por %p6211_p12, %p6210_p11 }
0x25ec   : > { %p6213_p0 = pnand %p6212_p13, %p6206_p8 }
0x25ee   : > { %6216 = shalt.err (!%p6213_p0)
}
0x25ef   : > { %6103 = dma.vmem_to_hbm [thread:$0]  (%p6428_p5), %s4985_s23, 128, %s7237_s22, %s4958_s24  }
0x25f0   : > { %s7364_s4 = sshll.u32 %s6906_s20, 3  ;;  %s7365_s21 = sshll.u32 %s6411_s1, 7 }
0x25f1   : > { %s597_s0 = scalar_lea.vmem [#allocation2], %s7364_s4  ;;  %s7366_s19 = sld [smem:[#allocation19_spill]] }
0x25f2   : > { %s4971_s18 = sshll.u32 %s597_s0, 4  ;;  %s4953_s22 = scalar_lea.sflag [#allocation3], %s6906_s20  ;;  %s7269_s18 = int_to_ptr.vmem [resolvable:$true] %s4971_s18 }
0x25f3   : > { %s6217_s23 = scalar_lea.vmem %s7269_s18, 128  ;;  %s6289_s24 = smov [#allocation2]  }
0x25f4   : > { %p6218_p1 = scmp.ne.s32.totalorder %s7269_s18, %s6217_s23  ;;  %s6221_s1 = sshll.u32 %s6289_s24, 4  ;;  %s6222_s1 = int_to_ptr.vmem [resolvable:$false] %s6221_s1 }
0x25f5   : > { %s6223_s4 = scalar_lea.vmem %s6222_s1, 256  ;;  %p6224_p4 = scmp.lt.s32.totalorder %s7269_s18, %s6222_s1 }
0x25f6   : > { %p6219_p2 = pnand %p6218_p1, %p6428_p5  ;;  %p6225_p7 = scmp.lt.s32.totalorder %s6223_s4, %s6217_s23 }
0x25f7   : > { %s7267_s2 = scalar_lea.hbm %s7366_s19, %s7365_s21 }
0x25f8   : > { %p6220_p3 = pneg %p6219_p2  ;;  %p6226_p8 = por %p6225_p7, %p6224_p4 }
0x25fa   : > { %p6227_p9 = pnand %p6226_p8, %p6220_p3 }
0x266f   : > { %v4932_v37 = vpop.xlane.xlu1 %4931 }
0x2670   : > { %v4933_v43 = vmul.f32 0.03125, %v4932_v37 }
0x2672   : > { %v4934_v57 = vadd.f32 1e-05, %v4933_v43 }
0x2674   : > { %6187 = vrsqrt.f32 %v4934_v57 }
0x267e   : > { %v6188_v1 = vpop.eup %6187 }
0x267f   : > { %v4936_v2 = vmul.f32 %v6188_v1, %v4928_v8 }
0x2681   : > { %v4943_v55 = vmul.f32 %v7034_v9, %v4936_v2 }
0x2683   : > { %v4950_v61 = vadd.f32 %v7039_v16, %v4943_v55 }
0x2685   : > { %4951 = vst.msk [vmem:[%s597_s0] sm:$0xff] %vm623_vm1, %v4950_v61 }
0x2686   : > { %6230 = shalt.err (!%p6227_p9)
}
0x2687   : > { %s6231_s20 = scalar_lea.hbm %s7267_s2, 128  ;;  %s6235_s26 = scalar_lea.hbm %s7366_s19, 256 }
0x2688   : > { %p6232_p10 = scmp.ne.s32.totalorder %s7267_s2, %s6231_s20  ;;  %p6236_p13 = scmp.lt.u32.totalorder %s7267_s2, %s7366_s19 }
0x2689   : > { %p6237_p0 = scmp.lt.u32.totalorder %s6235_s26, %s6231_s20  ;;  %p6239_p2 = scmp.lt.u32.totalorder %s6231_s20, %s7267_s2 }
0x268a   : > { %p6233_p11 = pnand %p6232_p10, %p6428_p5 }
0x268b   : > { %p6238_p1 = por %p6237_p0, %p6236_p13 }
0x268c   : > { %p6234_p12 = pneg %p6233_p11 }
0x268d   : > { %p6240_p3 = por %p6239_p2, %p6238_p1 }
0x268f   : > { %p6241_p4 = pnand %p6240_p3, %p6234_p12 }
0x2691   : > { %6244 = shalt.err (!%p6241_p4)
}
0x2692   : > { %6102 = dma.vmem_to_hbm [thread:$0]  (%p6428_p5), %s7269_s18, 128, %s7267_s2, %s4953_s22  }
0x2693 PF: > { %s7367_s23 = sld [smem:[#allocation10_spill]]  ;;  %s7368_s1 = sld [smem:[#allocation8_spill]] }
0x2699   : > { %p6113_p7 = scmp.ge.s32.totalorder %s7367_s23, 2  ;;  %s4996_s0 = sand.u32 1, %s7368_s1  }
0x269a   : > { %s4997_s21 = scalar_lea.sflag [#allocation3], %s4996_s0 }
0x269b   : > { %p6107_p8 = pnand %p6113_p7, %p6432_p6 }
0x269d   : > { %6262 = dma.done.wait (!%p6107_p8), %s4997_s21, 128  }
0x269e   : > { %6264 = vsyncadd (!%p6107_p8), %s4997_s21, 4294967168  ;;  %s5006_s20 = scalar_lea.sflag [#allocation5], %s4996_s0 }
0x269f   : > { %6266 = dma.done.wait (!%p6107_p8), %s5006_s20, 128  }
0x26a0   : > { %6268 = vsyncadd (!%p6107_p8), %s5006_s20, 4294967168  ;;  %s7370_s21 = sld [smem:[#allocation11_spill]]  ;;  %s7371_s3 = sld [smem:[#allocation9_spill]] }
0x26a1   : > { %s7372_s20 = sld [smem:[#allocation12_spill]]  ;;  %s7373_s0 = smov %s6275_s30 }
0x26a6   : > { %p33_p5 = scmp.ge.s32.totalorder %s7370_s21, 4   ;;  %s7374_s30 = smov %s7371_s3 }
0x26a8   :  { %35 = sbr.rel (!%p33_p5) target bundleno = 13 (0xd), region = 165 }
0x26af   :  { %5011 = vsyncpa [#allocation3], 1 }
0x26b0   :  { %5013 = vsyncpa [#allocation3 + $0x1], 1 }
0x26b1   :  { %5014 = vsyncpa [#allocation5], 1 }
0x26b2   :  { %5016 = vsyncpa [#allocation5 + $0x1], 1 }

</bundles_post_ra>
